<compile_context>
chip_gen: v5e
topology: v5e:2x2
jax: 0.10.0
libtpu: 0.0.40
codegen_flags: <defaults>
</compile_context>

<pallas_src>
import jax
import jax.numpy as jnp
from jax.experimental import pallas as pl
from jax.experimental.pallas import tpu as pltpu


def _sigmoid(x):
    # EUP exp + EUP approx reciprocal (keeps the VALU free).
    return pl.reciprocal(1.0 + jnp.exp(-x), approx=True)


def _relu(x):
    return jnp.maximum(x, 0.0)


def _leaky_relu(x, slope=0.2):
    return jnp.where(x > 0.0, x, slope * x)


def _gat(xl, asrc, adst, bias, abias):
    """Dense single-head PyG GATConv given already-transformed features xl = x @ W.

    abias[i, j] = 0.0 if there is an edge j -> i (incl. self loops), else ~-1e30.
    """
    # per-node attention logits: VPU multiply + lane reduce (no MXU transposed feed)
    a_dst = jnp.sum(xl * adst, axis=1, keepdims=True)            # [N, 1]
    a_src = jnp.sum(xl * asrc, axis=1, keepdims=True)            # [N, 1]
    e = _leaky_relu(a_dst + jnp.transpose(a_src)) + abias        # [N, N]
    e = e - jnp.max(e, axis=1, keepdims=True)                    # row max finite (self loop)
    p = jnp.exp(e)                                               # masked lanes underflow to 0
    p = p * pl.reciprocal(jnp.sum(p, axis=1, keepdims=True), approx=True)
    return jnp.dot(p, xl, preferred_element_type=jnp.float32) + bias


def netall_kernel(x_ref, abias_ref,
                  wf_ref, bf_ref, w2_ref, b2_ref,
                  g1w, g1as, g1ad, g1b,
                  g2w, g2as, g2ad, g2b,
                  g3w, g3as, g3ad, g3b,
                  l1wx, l1wt, l1b,
                  l2w, l2b,
                  l3w, l3b,
                  o_ref):
    abias = abias_ref[...]

    # ---- fused front-end: 4 branch first layers + LSTM input projection, ONE matmul ----
    z = jnp.dot(x_ref[...], wf_ref[...], preferred_element_type=jnp.float32) + bf_ref[...]  # [N,576]

    # ---- branch second layer: one block-diagonal [384,384] matmul ----
    xb = _relu(jnp.dot(_sigmoid(z[:, 0:384]), w2_ref[...],
                       preferred_element_type=jnp.float32) + b2_ref[...])                   # [N,384]

    # ---- GAT stack (GAT1 input transform is a single [N,384]@[384,128] matmul) ----
    x = _relu(_gat(jnp.dot(xb, g1w[...], preferred_element_type=jnp.float32),
                   g1as[...], g1ad[...], g1b[...], abias))                                  # [N,128]
    x = _relu(_gat(jnp.dot(x, g2w[...], preferred_element_type=jnp.float32),
                   g2as[...], g2ad[...], g2b[...], abias))                                  # [N,128]
    x = _relu(_gat(jnp.dot(x, g3w[...], preferred_element_type=jnp.float32),
                   g3as[...], g3ad[...], g3b[...], abias))                                  # [N,64]

    # ---- LSTM: seq_len = 1, h0 = c0 = 0.  Forget gate is dead (c0 == 0) and was removed;
    # the i/g/o gate pre-activations already came out of the fused front-end matmul. ----
    gi = _sigmoid(z[:, 384:448])
    gg = jnp.tanh(z[:, 448:512])
    go = _sigmoid(z[:, 512:576])
    h = go * jnp.tanh(gi * gg)                                                              # [N,64]

    # ---- head: concat(x, h) @ W1 == x @ W1[:64] + h @ W1[64:] ----
    y = _relu(jnp.dot(x, l1wx[...], preferred_element_type=jnp.float32)
              + jnp.dot(h, l1wt[...], preferred_element_type=jnp.float32) + l1b[...])
    y = _relu(jnp.dot(y, l2w[...], preferred_element_type=jnp.float32) + l2b[...])
    # lane-dense [N,128] store; true width is 56 (weight/bias zero-padded), wrapper slices.
    o_ref[...] = jnp.dot(y, l3w[...], preferred_element_type=jnp.float32) + l3b[...]


# ---------------------------------------------------------------------------
# Parameter construction (deterministic, PyTorch-default-style uniform init),
# packed into the fused layout the kernel expects.
# ---------------------------------------------------------------------------
def _linear(key, fan_in, fan_out):
    kw, kb = jax.random.split(key)
    bound = float(1.0 / (fan_in ** 0.5))
    w = jax.random.uniform(kw, (fan_in, fan_out), jnp.float32, -bound, bound)
    b = jax.random.uniform(kb, (1, fan_out), jnp.float32, -bound, bound)
    return w, b


def _gat_params(key, fan_in, fan_out):
    kw, ks, kd, _ = jax.random.split(key, 4)
    g = float((6.0 / (fan_in + fan_out)) ** 0.5)
    w = jax.random.uniform(kw, (fan_in, fan_out), jnp.float32, -g, g)
    ga = float((6.0 / (1 + fan_out)) ** 0.5)
    asrc = jax.random.uniform(ks, (1, fan_out), jnp.float32, -ga, ga)
    adst = jax.random.uniform(kd, (1, fan_out), jnp.float32, -ga, ga)
    bias = jnp.zeros((1, fan_out), jnp.float32)
    return w, asrc, adst, bias


def build_params(key):
    keys = jax.random.split(key, 16)
    ki = iter(keys)

    # separated MLP branches
    s1w, s1b = _linear(next(ki), 2, 64);    s5w, s5b = _linear(next(ki), 64, 64)
    s2w, s2b = _linear(next(ki), 13, 64);   s6w, s6b = _linear(next(ki), 64, 64)
    s3w, s3b = _linear(next(ki), 40, 128);  s7w, s7b = _linear(next(ki), 128, 128)
    s4w, s4b = _linear(next(ki), 365, 128); s8w, s8b = _linear(next(ki), 128, 128)

    # GAT layers (conv1 input width = 384 = 64+64+128+128, see NOTE above)
    g1w, g1as, g1ad, g1b = _gat_params(next(ki), 384, 128)
    g2w, g2as, g2ad, g2b = _gat_params(next(ki), 128, 128)
    g3w, g3as, g3ad, g3b = _gat_params(next(ki), 128, 64)

    # LSTM(20 -> 64), num_layers=1.  PyTorch gate order is (i, f, g, o).
    H, I = 64, 20
    bound = float(1.0 / (H ** 0.5))
    kih, kbih, kbhh = jax.random.split(next(ki), 3)
    wih = jax.random.uniform(kih, (4 * H, I), jnp.float32, -bound, bound).T      # [20, 256]
    bih = jax.random.uniform(kbih, (4 * H,), jnp.float32, -bound, bound)
    bhh = jax.random.uniform(kbhh, (4 * H,), jnp.float32, -bound, bound)
    b_all = (bih + bhh).reshape(1, 4 * H)
    # TODO(synk): W_hh and the forget gate never affect the output (h0 == c0 == 0,
    # seq_len == 1), so they are dropped entirely (not passed to the kernel).
    w_igo = jnp.concatenate([wih[:, 0:H], wih[:, 2*H:3*H], wih[:, 3*H:4*H]], axis=1)   # [20,192]
    b_igo = jnp.concatenate([b_all[:, 0:H], b_all[:, 2*H:3*H], b_all[:, 3*H:4*H]], axis=1)

    # head
    l1w, l1b = _linear(next(ki), 128, 64)
    l2w, l2b = _linear(next(ki), 64, 64)
    l3w, l3b = _linear(next(ki), 64, 56)

    # ---- pack the fused front-end weight [441, 576]:
    #      cols 0:384   = block-structured branch first layers (rows = x_all columns)
    #      cols 384:576 = LSTM input projection for gates (i, g, o)  (rows 421:441)
    w_front = jnp.zeros((441, 576), jnp.float32)
    w_front = w_front.at[1:3,     0:64 ].set(s1w)
    w_front = w_front.at[3:16,   64:128].set(s2w)
    w_front = w_front.at[16:56, 128:256].set(s3w)
    w_front = w_front.at[56:421,256:384].set(s4w)
    w_front = w_front.at[421:441,384:576].set(w_igo)
    b_front = jnp.concatenate([s1b, s2b, s3b, s4b, b_igo], axis=1)               # [1,576]

    # ---- block-diagonal branch second layer [384, 384] ----
    w_blk2 = jnp.zeros((384, 384), jnp.float32)
    w_blk2 = w_blk2.at[0:64,     0:64 ].set(s5w)
    w_blk2 = w_blk2.at[64:128,  64:128].set(s6w)
    w_blk2 = w_blk2.at[128:256,128:256].set(s7w)
    w_blk2 = w_blk2.at[256:384,256:384].set(s8w)
    b_blk2 = jnp.concatenate([s5b, s6b, s7b, s8b], axis=1)                       # [1,384]

    # ---- zero-pad the output projection to a lane-dense 128-wide slab ----
    l3w_pad = jnp.zeros((64, 128), jnp.float32).at[:, 0:56].set(l3w)
    l3b_pad = jnp.zeros((1, 128), jnp.float32).at[:, 0:56].set(l3b)

    return [w_front, b_front, w_blk2, b_blk2,
            g1w, g1as, g1ad, g1b,
            g2w, g2as, g2ad, g2b,
            g3w, g3as, g3ad, g3b,
            l1w[0:64], l1w[64:128], l1b,
            l2w, l2b,
            l3w_pad, l3b_pad]


def build_adj_bias(edge_index, num_nodes):
    """Additive attention bias: 0 where edge j->i (incl. self loops), ~-1e30 elsewhere.
    Hoisted out of the per-call path (edge_index is static across calls)."""
    adj = jnp.zeros((num_nodes, num_nodes), jnp.float32)
    adj = adj.at[edge_index[1], edge_index[0]].set(1.0)
    adj = jnp.maximum(adj, jnp.eye(num_nodes, dtype=jnp.float32))   # GATConv add_self_loops
    return (adj - 1.0) * 1e30


@jax.jit
def netall_forward(x_all, adj_bias, params):
    N = x_all.shape[0]
    inputs = [x_all, adj_bias] + list(params)
    vmem = pl.BlockSpec(memory_space=pltpu.MemorySpace.VMEM)
    # TODO(synk): for N >~ 1k (esp. v7x's 64 MiB VMEM), tile the GAT softmax over
    # destination-row blocks with a grid/BlockSpec and add a "parallel" node axis for
    # the per-node front-end/LSTM/head; whole-graph-in-VMEM is the right call at N=8.
    out = pl.pallas_call(
        netall_kernel,
        out_shape=jax.ShapeDtypeStruct((N, 128), jnp.float32),
        in_specs=[vmem] * len(inputs),
        out_specs=vmem,
    )(*inputs)
    return out[:, :56]


if __name__ == "__main__":
    key = jax.random.PRNGKey(0)
    kx, kp = jax.random.split(key)

    N = 8                                   # number of graph nodes
    x_all = jax.random.normal(kx, (N, 441), jnp.float32)
    # simple bidirectional ring graph
    src = jnp.arange(N, dtype=jnp.int32)
    dst = (src + 1) % N
    edge_index = jnp.stack([jnp.concatenate([src, dst]),
                            jnp.concatenate([dst, src])], axis=0)   # [2, 16]

    params = build_params(kp)
    adj_bias = jax.block_until_ready(build_adj_bias(edge_index, N))  # hoisted, one-time

    out = netall_forward(x_all, adj_bias, params)
    out = jax.block_until_ready(out)
    assert out.shape == (N, 56) and bool(jnp.all(jnp.isfinite(out)))
    print("KERNEL_OK")
</pallas_src>

<mosaic_0001>
module attributes {stable_mosaic.version = 11 : i64} {
  func.func @netall_kernel(%arg0: memref<8x441xf32, #tpu.memory_space<vmem>>, %arg1: memref<8x8xf32, #tpu.memory_space<vmem>>, %arg2: memref<441x576xf32, #tpu.memory_space<vmem>>, %arg3: memref<1x576xf32, #tpu.memory_space<vmem>>, %arg4: memref<384x384xf32, #tpu.memory_space<vmem>>, %arg5: memref<1x384xf32, #tpu.memory_space<vmem>>, %arg6: memref<384x128xf32, #tpu.memory_space<vmem>>, %arg7: memref<1x128xf32, #tpu.memory_space<vmem>>, %arg8: memref<1x128xf32, #tpu.memory_space<vmem>>, %arg9: memref<1x128xf32, #tpu.memory_space<vmem>>, %arg10: memref<128x128xf32, #tpu.memory_space<vmem>>, %arg11: memref<1x128xf32, #tpu.memory_space<vmem>>, %arg12: memref<1x128xf32, #tpu.memory_space<vmem>>, %arg13: memref<1x128xf32, #tpu.memory_space<vmem>>, %arg14: memref<128x64xf32, #tpu.memory_space<vmem>>, %arg15: memref<1x64xf32, #tpu.memory_space<vmem>>, %arg16: memref<1x64xf32, #tpu.memory_space<vmem>>, %arg17: memref<1x64xf32, #tpu.memory_space<vmem>>, %arg18: memref<64x64xf32, #tpu.memory_space<vmem>>, %arg19: memref<64x64xf32, #tpu.memory_space<vmem>>, %arg20: memref<1x64xf32, #tpu.memory_space<vmem>>, %arg21: memref<64x64xf32, #tpu.memory_space<vmem>>, %arg22: memref<1x64xf32, #tpu.memory_space<vmem>>, %arg23: memref<64x128xf32, #tpu.memory_space<vmem>>, %arg24: memref<1x128xf32, #tpu.memory_space<vmem>>, %arg25: memref<8x128xf32, #tpu.memory_space<vmem>>) attributes {dimension_semantics = [], scalar_prefetch = 0 : i64, scratch_operands = 0 : i64, tpu.core_type = #tpu.core_type<tc>} {
    %c0 = arith.constant 0 : index
    %c0_0 = arith.constant 0 : index
    %0 = vector.load %arg1[%c0, %c0_0] : memref<8x8xf32, #tpu.memory_space<vmem>>, vector<8x8xf32>
    %c0_1 = arith.constant 0 : index
    %c0_2 = arith.constant 0 : index
    %1 = vector.load %arg0[%c0_1, %c0_2] : memref<8x441xf32, #tpu.memory_space<vmem>>, vector<8x441xf32>
    %c0_3 = arith.constant 0 : index
    %c0_4 = arith.constant 0 : index
    %2 = vector.load %arg2[%c0_3, %c0_4] : memref<441x576xf32, #tpu.memory_space<vmem>>, vector<441x576xf32>
    %cst = arith.constant dense<0.000000e+00> : vector<8x576xf32>
    %3 = tpu.matmul %1, %2, %cst {dimension_numbers = #tpu.dot_dimension_numbers<[1], [0], [0], [1], [0, 0, 1, 1], [], []>} : vector<8x441xf32>, vector<441x576xf32>, vector<8x576xf32> -> vector<8x576xf32>
    %c0_5 = arith.constant 0 : index
    %c0_6 = arith.constant 0 : index
    %4 = vector.load %arg3[%c0_5, %c0_6] : memref<1x576xf32, #tpu.memory_space<vmem>>, vector<1x576xf32>
    %5 = vector.broadcast %4 : vector<1x576xf32> to vector<8x576xf32>
    %6 = arith.addf %3, %5 : vector<8x576xf32>
    %7 = vector.extract_strided_slice %6 {offsets = [0, 0], sizes = [8, 384], strides = [1, 1]} : vector<8x576xf32> to vector<8x384xf32>
    %cst_7 = arith.constant 0.000000e+00 : f32
    %8 = vector.broadcast %cst_7 : f32 to vector<8x384xf32>
    %9 = arith.subf %8, %7 : vector<8x384xf32>
    %10 = math.exp %9 : vector<8x384xf32>
    %cst_8 = arith.constant 1.000000e+00 : f32
    %11 = vector.broadcast %cst_8 : f32 to vector<8x384xf32>
    %12 = arith.addf %11, %10 : vector<8x384xf32>
    %13 = tpu.reciprocal %12 {approx = true} : vector<8x384xf32> -> vector<8x384xf32>
    %c0_9 = arith.constant 0 : index
    %c0_10 = arith.constant 0 : index
    %14 = vector.load %arg4[%c0_9, %c0_10] : memref<384x384xf32, #tpu.memory_space<vmem>>, vector<384x384xf32>
    %cst_11 = arith.constant dense<0.000000e+00> : vector<8x384xf32>
    %15 = tpu.matmul %13, %14, %cst_11 {dimension_numbers = #tpu.dot_dimension_numbers<[1], [0], [0], [1], [0, 0, 1, 1], [], []>} : vector<8x384xf32>, vector<384x384xf32>, vector<8x384xf32> -> vector<8x384xf32>
    %c0_12 = arith.constant 0 : index
    %c0_13 = arith.constant 0 : index
    %16 = vector.load %arg5[%c0_12, %c0_13] : memref<1x384xf32, #tpu.memory_space<vmem>>, vector<1x384xf32>
    %17 = vector.broadcast %16 : vector<1x384xf32> to vector<8x384xf32>
    %18 = arith.addf %15, %17 : vector<8x384xf32>
    %cst_14 = arith.constant 0.000000e+00 : f32
    %19 = vector.broadcast %cst_14 : f32 to vector<8x384xf32>
    %20 = arith.maximumf %18, %19 : vector<8x384xf32>
    %c0_15 = arith.constant 0 : index
    %c0_16 = arith.constant 0 : index
    %21 = vector.load %arg6[%c0_15, %c0_16] : memref<384x128xf32, #tpu.memory_space<vmem>>, vector<384x128xf32>
    %cst_17 = arith.constant dense<0.000000e+00> : vector<8x128xf32>
    %22 = tpu.matmul %20, %21, %cst_17 {dimension_numbers = #tpu.dot_dimension_numbers<[1], [0], [0], [1], [0, 0, 1, 1], [], []>} : vector<8x384xf32>, vector<384x128xf32>, vector<8x128xf32> -> vector<8x128xf32>
    %c0_18 = arith.constant 0 : index
    %c0_19 = arith.constant 0 : index
    %23 = vector.load %arg7[%c0_18, %c0_19] : memref<1x128xf32, #tpu.memory_space<vmem>>, vector<1x128xf32>
    %c0_20 = arith.constant 0 : index
    %c0_21 = arith.constant 0 : index
    %24 = vector.load %arg8[%c0_20, %c0_21] : memref<1x128xf32, #tpu.memory_space<vmem>>, vector<1x128xf32>
    %c0_22 = arith.constant 0 : index
    %c0_23 = arith.constant 0 : index
    %25 = vector.load %arg9[%c0_22, %c0_23] : memref<1x128xf32, #tpu.memory_space<vmem>>, vector<1x128xf32>
    %26 = vector.broadcast %24 : vector<1x128xf32> to vector<8x128xf32>
    %27 = arith.mulf %22, %26 : vector<8x128xf32>
    %cst_24 = arith.constant dense<0.000000e+00> : vector<8xf32>
    %28 = vector.multi_reduction <add>, %27, %cst_24 [1] : vector<8x128xf32> to vector<8xf32>
    %29 = vector.shape_cast %28 : vector<8xf32> to vector<8x1xf32>
    %30 = vector.broadcast %23 : vector<1x128xf32> to vector<8x128xf32>
    %31 = arith.mulf %22, %30 : vector<8x128xf32>
    %cst_25 = arith.constant dense<0.000000e+00> : vector<8xf32>
    %32 = vector.multi_reduction <add>, %31, %cst_25 [1] : vector<8x128xf32> to vector<8xf32>
    %33 = vector.shape_cast %32 : vector<8xf32> to vector<8x1xf32>
    %34 = tpu.transpose %33, [1, 0] : vector<8x1xf32> -> vector<1x8xf32>
    %35 = vector.broadcast %29 : vector<8x1xf32> to vector<8x8xf32>
    %36 = vector.broadcast %34 : vector<1x8xf32> to vector<8x8xf32>
    %37 = arith.addf %35, %36 : vector<8x8xf32>
    %cst_26 = arith.constant 0.000000e+00 : f32
    %38 = vector.broadcast %cst_26 : f32 to vector<8x8xf32>
    %39 = arith.cmpf ogt, %37, %38 : vector<8x8xf32>
    %cst_27 = arith.constant 2.000000e-01 : f32
    %40 = vector.broadcast %cst_27 : f32 to vector<8x8xf32>
    %41 = arith.mulf %40, %37 : vector<8x8xf32>
    %42 = arith.select %39, %37, %41 : vector<8x8xi1>, vector<8x8xf32>
    %43 = arith.addf %42, %0 : vector<8x8xf32>
    %cst_28 = arith.constant dense<0xFF800000> : vector<8xf32>
    %44 = vector.multi_reduction <maximumf>, %43, %cst_28 [1] : vector<8x8xf32> to vector<8xf32>
    %45 = vector.shape_cast %44 : vector<8xf32> to vector<8x1xf32>
    %46 = vector.broadcast %45 : vector<8x1xf32> to vector<8x8xf32>
    %47 = arith.subf %43, %46 : vector<8x8xf32>
    %48 = math.exp %47 : vector<8x8xf32>
    %cst_29 = arith.constant dense<0.000000e+00> : vector<8xf32>
    %49 = vector.multi_reduction <add>, %48, %cst_29 [1] : vector<8x8xf32> to vector<8xf32>
    %50 = vector.shape_cast %49 : vector<8xf32> to vector<8x1xf32>
    %51 = tpu.reciprocal %50 {approx = true} : vector<8x1xf32> -> vector<8x1xf32>
    %52 = vector.broadcast %51 : vector<8x1xf32> to vector<8x8xf32>
    %53 = arith.mulf %48, %52 : vector<8x8xf32>
    %cst_30 = arith.constant dense<0.000000e+00> : vector<8x128xf32>
    %54 = tpu.matmul %53, %22, %cst_30 {dimension_numbers = #tpu.dot_dimension_numbers<[1], [0], [0], [1], [0, 0, 1, 1], [], []>} : vector<8x8xf32>, vector<8x128xf32>, vector<8x128xf32> -> vector<8x128xf32>
    %55 = vector.broadcast %25 : vector<1x128xf32> to vector<8x128xf32>
    %56 = arith.addf %54, %55 : vector<8x128xf32>
    %cst_31 = arith.constant 0.000000e+00 : f32
    %57 = vector.broadcast %cst_31 : f32 to vector<8x128xf32>
    %58 = arith.maximumf %56, %57 : vector<8x128xf32>
    %c0_32 = arith.constant 0 : index
    %c0_33 = arith.constant 0 : index
    %59 = vector.load %arg10[%c0_32, %c0_33] : memref<128x128xf32, #tpu.memory_space<vmem>>, vector<128x128xf32>
    %cst_34 = arith.constant dense<0.000000e+00> : vector<8x128xf32>
    %60 = tpu.matmul %58, %59, %cst_34 {dimension_numbers = #tpu.dot_dimension_numbers<[1], [0], [0], [1], [0, 0, 1, 1], [], []>} : vector<8x128xf32>, vector<128x128xf32>, vector<8x128xf32> -> vector<8x128xf32>
    %c0_35 = arith.constant 0 : index
    %c0_36 = arith.constant 0 : index
    %61 = vector.load %arg11[%c0_35, %c0_36] : memref<1x128xf32, #tpu.memory_space<vmem>>, vector<1x128xf32>
    %c0_37 = arith.constant 0 : index
    %c0_38 = arith.constant 0 : index
    %62 = vector.load %arg12[%c0_37, %c0_38] : memref<1x128xf32, #tpu.memory_space<vmem>>, vector<1x128xf32>
    %c0_39 = arith.constant 0 : index
    %c0_40 = arith.constant 0 : index
    %63 = vector.load %arg13[%c0_39, %c0_40] : memref<1x128xf32, #tpu.memory_space<vmem>>, vector<1x128xf32>
    %64 = vector.broadcast %62 : vector<1x128xf32> to vector<8x128xf32>
    %65 = arith.mulf %60, %64 : vector<8x128xf32>
    %cst_41 = arith.constant dense<0.000000e+00> : vector<8xf32>
    %66 = vector.multi_reduction <add>, %65, %cst_41 [1] : vector<8x128xf32> to vector<8xf32>
    %67 = vector.shape_cast %66 : vector<8xf32> to vector<8x1xf32>
    %68 = vector.broadcast %61 : vector<1x128xf32> to vector<8x128xf32>
    %69 = arith.mulf %60, %68 : vector<8x128xf32>
    %cst_42 = arith.constant dense<0.000000e+00> : vector<8xf32>
    %70 = vector.multi_reduction <add>, %69, %cst_42 [1] : vector<8x128xf32> to vector<8xf32>
    %71 = vector.shape_cast %70 : vector<8xf32> to vector<8x1xf32>
    %72 = tpu.transpose %71, [1, 0] : vector<8x1xf32> -> vector<1x8xf32>
    %73 = vector.broadcast %67 : vector<8x1xf32> to vector<8x8xf32>
    %74 = vector.broadcast %72 : vector<1x8xf32> to vector<8x8xf32>
    %75 = arith.addf %73, %74 : vector<8x8xf32>
    %cst_43 = arith.constant 0.000000e+00 : f32
    %76 = vector.broadcast %cst_43 : f32 to vector<8x8xf32>
    %77 = arith.cmpf ogt, %75, %76 : vector<8x8xf32>
    %cst_44 = arith.constant 2.000000e-01 : f32
    %78 = vector.broadcast %cst_44 : f32 to vector<8x8xf32>
    %79 = arith.mulf %78, %75 : vector<8x8xf32>
    %80 = arith.select %77, %75, %79 : vector<8x8xi1>, vector<8x8xf32>
    %81 = arith.addf %80, %0 : vector<8x8xf32>
    %cst_45 = arith.constant dense<0xFF800000> : vector<8xf32>
    %82 = vector.multi_reduction <maximumf>, %81, %cst_45 [1] : vector<8x8xf32> to vector<8xf32>
    %83 = vector.shape_cast %82 : vector<8xf32> to vector<8x1xf32>
    %84 = vector.broadcast %83 : vector<8x1xf32> to vector<8x8xf32>
    %85 = arith.subf %81, %84 : vector<8x8xf32>
    %86 = math.exp %85 : vector<8x8xf32>
    %cst_46 = arith.constant dense<0.000000e+00> : vector<8xf32>
    %87 = vector.multi_reduction <add>, %86, %cst_46 [1] : vector<8x8xf32> to vector<8xf32>
    %88 = vector.shape_cast %87 : vector<8xf32> to vector<8x1xf32>
    %89 = tpu.reciprocal %88 {approx = true} : vector<8x1xf32> -> vector<8x1xf32>
    %90 = vector.broadcast %89 : vector<8x1xf32> to vector<8x8xf32>
    %91 = arith.mulf %86, %90 : vector<8x8xf32>
    %cst_47 = arith.constant dense<0.000000e+00> : vector<8x128xf32>
    %92 = tpu.matmul %91, %60, %cst_47 {dimension_numbers = #tpu.dot_dimension_numbers<[1], [0], [0], [1], [0, 0, 1, 1], [], []>} : vector<8x8xf32>, vector<8x128xf32>, vector<8x128xf32> -> vector<8x128xf32>
    %93 = vector.broadcast %63 : vector<1x128xf32> to vector<8x128xf32>
    %94 = arith.addf %92, %93 : vector<8x128xf32>
    %cst_48 = arith.constant 0.000000e+00 : f32
    %95 = vector.broadcast %cst_48 : f32 to vector<8x128xf32>
    %96 = arith.maximumf %94, %95 : vector<8x128xf32>
    %c0_49 = arith.constant 0 : index
    %c0_50 = arith.constant 0 : index
    %97 = vector.load %arg14[%c0_49, %c0_50] : memref<128x64xf32, #tpu.memory_space<vmem>>, vector<128x64xf32>
    %cst_51 = arith.constant dense<0.000000e+00> : vector<8x64xf32>
    %98 = tpu.matmul %96, %97, %cst_51 {dimension_numbers = #tpu.dot_dimension_numbers<[1], [0], [0], [1], [0, 0, 1, 1], [], []>} : vector<8x128xf32>, vector<128x64xf32>, vector<8x64xf32> -> vector<8x64xf32>
    %c0_52 = arith.constant 0 : index
    %c0_53 = arith.constant 0 : index
    %99 = vector.load %arg15[%c0_52, %c0_53] : memref<1x64xf32, #tpu.memory_space<vmem>>, vector<1x64xf32>
    %c0_54 = arith.constant 0 : index
    %c0_55 = arith.constant 0 : index
    %100 = vector.load %arg16[%c0_54, %c0_55] : memref<1x64xf32, #tpu.memory_space<vmem>>, vector<1x64xf32>
    %c0_56 = arith.constant 0 : index
    %c0_57 = arith.constant 0 : index
    %101 = vector.load %arg17[%c0_56, %c0_57] : memref<1x64xf32, #tpu.memory_space<vmem>>, vector<1x64xf32>
    %102 = vector.broadcast %100 : vector<1x64xf32> to vector<8x64xf32>
    %103 = arith.mulf %98, %102 : vector<8x64xf32>
    %cst_58 = arith.constant dense<0.000000e+00> : vector<8xf32>
    %104 = vector.multi_reduction <add>, %103, %cst_58 [1] : vector<8x64xf32> to vector<8xf32>
    %105 = vector.shape_cast %104 : vector<8xf32> to vector<8x1xf32>
    %106 = vector.broadcast %99 : vector<1x64xf32> to vector<8x64xf32>
    %107 = arith.mulf %98, %106 : vector<8x64xf32>
    %cst_59 = arith.constant dense<0.000000e+00> : vector<8xf32>
    %108 = vector.multi_reduction <add>, %107, %cst_59 [1] : vector<8x64xf32> to vector<8xf32>
    %109 = vector.shape_cast %108 : vector<8xf32> to vector<8x1xf32>
    %110 = tpu.transpose %109, [1, 0] : vector<8x1xf32> -> vector<1x8xf32>
    %111 = vector.broadcast %105 : vector<8x1xf32> to vector<8x8xf32>
    %112 = vector.broadcast %110 : vector<1x8xf32> to vector<8x8xf32>
    %113 = arith.addf %111, %112 : vector<8x8xf32>
    %cst_60 = arith.constant 0.000000e+00 : f32
    %114 = vector.broadcast %cst_60 : f32 to vector<8x8xf32>
    %115 = arith.cmpf ogt, %113, %114 : vector<8x8xf32>
    %cst_61 = arith.constant 2.000000e-01 : f32
    %116 = vector.broadcast %cst_61 : f32 to vector<8x8xf32>
    %117 = arith.mulf %116, %113 : vector<8x8xf32>
    %118 = arith.select %115, %113, %117 : vector<8x8xi1>, vector<8x8xf32>
    %119 = arith.addf %118, %0 : vector<8x8xf32>
    %cst_62 = arith.constant dense<0xFF800000> : vector<8xf32>
    %120 = vector.multi_reduction <maximumf>, %119, %cst_62 [1] : vector<8x8xf32> to vector<8xf32>
    %121 = vector.shape_cast %120 : vector<8xf32> to vector<8x1xf32>
    %122 = vector.broadcast %121 : vector<8x1xf32> to vector<8x8xf32>
    %123 = arith.subf %119, %122 : vector<8x8xf32>
    %124 = math.exp %123 : vector<8x8xf32>
    %cst_63 = arith.constant dense<0.000000e+00> : vector<8xf32>
    %125 = vector.multi_reduction <add>, %124, %cst_63 [1] : vector<8x8xf32> to vector<8xf32>
    %126 = vector.shape_cast %125 : vector<8xf32> to vector<8x1xf32>
    %127 = tpu.reciprocal %126 {approx = true} : vector<8x1xf32> -> vector<8x1xf32>
    %128 = vector.broadcast %127 : vector<8x1xf32> to vector<8x8xf32>
    %129 = arith.mulf %124, %128 : vector<8x8xf32>
    %cst_64 = arith.constant dense<0.000000e+00> : vector<8x64xf32>
    %130 = tpu.matmul %129, %98, %cst_64 {dimension_numbers = #tpu.dot_dimension_numbers<[1], [0], [0], [1], [0, 0, 1, 1], [], []>} : vector<8x8xf32>, vector<8x64xf32>, vector<8x64xf32> -> vector<8x64xf32>
    %131 = vector.broadcast %101 : vector<1x64xf32> to vector<8x64xf32>
    %132 = arith.addf %130, %131 : vector<8x64xf32>
    %cst_65 = arith.constant 0.000000e+00 : f32
    %133 = vector.broadcast %cst_65 : f32 to vector<8x64xf32>
    %134 = arith.maximumf %132, %133 : vector<8x64xf32>
    %135 = vector.extract_strided_slice %6 {offsets = [0, 384], sizes = [8, 64], strides = [1, 1]} : vector<8x576xf32> to vector<8x64xf32>
    %cst_66 = arith.constant 0.000000e+00 : f32
    %136 = vector.broadcast %cst_66 : f32 to vector<8x64xf32>
    %137 = arith.subf %136, %135 : vector<8x64xf32>
    %138 = math.exp %137 : vector<8x64xf32>
    %cst_67 = arith.constant 1.000000e+00 : f32
    %139 = vector.broadcast %cst_67 : f32 to vector<8x64xf32>
    %140 = arith.addf %139, %138 : vector<8x64xf32>
    %141 = tpu.reciprocal %140 {approx = true} : vector<8x64xf32> -> vector<8x64xf32>
    %142 = vector.extract_strided_slice %6 {offsets = [0, 448], sizes = [8, 64], strides = [1, 1]} : vector<8x576xf32> to vector<8x64xf32>
    %143 = math.tanh %142 : vector<8x64xf32>
    %144 = vector.extract_strided_slice %6 {offsets = [0, 512], sizes = [8, 64], strides = [1, 1]} : vector<8x576xf32> to vector<8x64xf32>
    %cst_68 = arith.constant 0.000000e+00 : f32
    %145 = vector.broadcast %cst_68 : f32 to vector<8x64xf32>
    %146 = arith.subf %145, %144 : vector<8x64xf32>
    %147 = math.exp %146 : vector<8x64xf32>
    %cst_69 = arith.constant 1.000000e+00 : f32
    %148 = vector.broadcast %cst_69 : f32 to vector<8x64xf32>
    %149 = arith.addf %148, %147 : vector<8x64xf32>
    %150 = tpu.reciprocal %149 {approx = true} : vector<8x64xf32> -> vector<8x64xf32>
    %151 = arith.mulf %141, %143 : vector<8x64xf32>
    %152 = math.tanh %151 : vector<8x64xf32>
    %153 = arith.mulf %150, %152 : vector<8x64xf32>
    %c0_70 = arith.constant 0 : index
    %c0_71 = arith.constant 0 : index
    %154 = vector.load %arg18[%c0_70, %c0_71] : memref<64x64xf32, #tpu.memory_space<vmem>>, vector<64x64xf32>
    %cst_72 = arith.constant dense<0.000000e+00> : vector<8x64xf32>
    %155 = tpu.matmul %134, %154, %cst_72 {dimension_numbers = #tpu.dot_dimension_numbers<[1], [0], [0], [1], [0, 0, 1, 1], [], []>} : vector<8x64xf32>, vector<64x64xf32>, vector<8x64xf32> -> vector<8x64xf32>
    %c0_73 = arith.constant 0 : index
    %c0_74 = arith.constant 0 : index
    %156 = vector.load %arg19[%c0_73, %c0_74] : memref<64x64xf32, #tpu.memory_space<vmem>>, vector<64x64xf32>
    %cst_75 = arith.constant dense<0.000000e+00> : vector<8x64xf32>
    %157 = tpu.matmul %153, %156, %cst_75 {dimension_numbers = #tpu.dot_dimension_numbers<[1], [0], [0], [1], [0, 0, 1, 1], [], []>} : vector<8x64xf32>, vector<64x64xf32>, vector<8x64xf32> -> vector<8x64xf32>
    %158 = arith.addf %155, %157 : vector<8x64xf32>
    %c0_76 = arith.constant 0 : index
    %c0_77 = arith.constant 0 : index
    %159 = vector.load %arg20[%c0_76, %c0_77] : memref<1x64xf32, #tpu.memory_space<vmem>>, vector<1x64xf32>
    %160 = vector.broadcast %159 : vector<1x64xf32> to vector<8x64xf32>
    %161 = arith.addf %158, %160 : vector<8x64xf32>
    %cst_78 = arith.constant 0.000000e+00 : f32
    %162 = vector.broadcast %cst_78 : f32 to vector<8x64xf32>
    %163 = arith.maximumf %161, %162 : vector<8x64xf32>
    %c0_79 = arith.constant 0 : index
    %c0_80 = arith.constant 0 : index
    %164 = vector.load %arg21[%c0_79, %c0_80] : memref<64x64xf32, #tpu.memory_space<vmem>>, vector<64x64xf32>
    %cst_81 = arith.constant dense<0.000000e+00> : vector<8x64xf32>
    %165 = tpu.matmul %163, %164, %cst_81 {dimension_numbers = #tpu.dot_dimension_numbers<[1], [0], [0], [1], [0, 0, 1, 1], [], []>} : vector<8x64xf32>, vector<64x64xf32>, vector<8x64xf32> -> vector<8x64xf32>
    %c0_82 = arith.constant 0 : index
    %c0_83 = arith.constant 0 : index
    %166 = vector.load %arg22[%c0_82, %c0_83] : memref<1x64xf32, #tpu.memory_space<vmem>>, vector<1x64xf32>
    %167 = vector.broadcast %166 : vector<1x64xf32> to vector<8x64xf32>
    %168 = arith.addf %165, %167 : vector<8x64xf32>
    %cst_84 = arith.constant 0.000000e+00 : f32
    %169 = vector.broadcast %cst_84 : f32 to vector<8x64xf32>
    %170 = arith.maximumf %168, %169 : vector<8x64xf32>
    %c0_85 = arith.constant 0 : index
    %c0_86 = arith.constant 0 : index
    %171 = vector.load %arg23[%c0_85, %c0_86] : memref<64x128xf32, #tpu.memory_space<vmem>>, vector<64x128xf32>
    %cst_87 = arith.constant dense<0.000000e+00> : vector<8x128xf32>
    %172 = tpu.matmul %170, %171, %cst_87 {dimension_numbers = #tpu.dot_dimension_numbers<[1], [0], [0], [1], [0, 0, 1, 1], [], []>} : vector<8x64xf32>, vector<64x128xf32>, vector<8x128xf32> -> vector<8x128xf32>
    %c0_88 = arith.constant 0 : index
    %c0_89 = arith.constant 0 : index
    %173 = vector.load %arg24[%c0_88, %c0_89] : memref<1x128xf32, #tpu.memory_space<vmem>>, vector<1x128xf32>
    %174 = vector.broadcast %173 : vector<1x128xf32> to vector<8x128xf32>
    %175 = arith.addf %172, %174 : vector<8x128xf32>
    %c0_90 = arith.constant 0 : index
    %c0_91 = arith.constant 0 : index
    %176 = vector.load %arg25[%c0_90, %c0_91] : memref<8x128xf32, #tpu.memory_space<vmem>>, vector<8x128xf32>
    tpu.vector_store %arg25[%c0_90, %c0_91], %175 {strides = array<i32>} : memref<8x128xf32, #tpu.memory_space<vmem>>, vector<8x128xf32>,
    return
  }
}

</mosaic_0001>

<bundles_post_ra>
// kernel: netall_forward.1
= control target key start
LH: loop header
LB: loop body
LE: loop exit
PB: predicated region body
PF: predicated region fallthrough
CT: control target
= control target key end

     0   :  { %s3239_s0 = inlined_call_operand.hbm [shape: f32[8,441], index: 0, kind: input, shape index: {}]   ;;  %s3240_s1 = inlined_call_operand.hbm [shape: f32[8,8], index: 1, kind: input, shape index: {}]   ;;  %s3241_s2 = inlined_call_operand.hbm [shape: f32[441,576], index: 2, kind: input, shape index: {}]   ;;  %s3242_s3 = inlined_call_operand.hbm [shape: f32[1,576], index: 3, kind: input, shape index: {}]   ;;  %s3243_s4 = inlined_call_operand.hbm [shape: f32[384,384], index: 4, kind: input, shape index: {}]   ;;  %s3244_s5 = inlined_call_operand.hbm [shape: f32[1,384], index: 5, kind: input, shape index: {}]   ;;  %s3245_s6 = inlined_call_operand.hbm [shape: f32[384,128], index: 6, kind: input, shape index: {}]   ;;  %s3246_s7 = inlined_call_operand.hbm [shape: f32[1,128], index: 7, kind: input, shape index: {}]   ;;  %s3247_s8 = inlined_call_operand.hbm [shape: f32[1,128], index: 8, kind: input, shape index: {}]   ;;  %s3248_s9 = inlined_call_operand.hbm [shape: f32[1,128], index: 9, kind: input, shape index: {}]   ;;  %s3249_s10 = inlined_call_operand.hbm [shape: f32[128,128], index: 10, kind: input, shape index: {}]   ;;  %s3250_s11 = inlined_call_operand.hbm [shape: f32[1,128], index: 11, kind: input, shape index: {}]   ;;  %s3251_s12 = inlined_call_operand.hbm [shape: f32[1,128], index: 12, kind: input, shape index: {}]   ;;  %s3252_s13 = inlined_call_operand.hbm [shape: f32[1,128], index: 13, kind: input, shape index: {}]   ;;  %s3253_s14 = inlined_call_operand.vmem [shape: f32[128,64], index: 14, kind: input, shape index: {}]   ;;  %s3254_s15 = inlined_call_operand.hbm [shape: f32[1,64], index: 15, kind: input, shape index: {}]   ;;  %s3255_s16 = inlined_call_operand.hbm [shape: f32[1,64], index: 16, kind: input, shape index: {}]   ;;  %s3256_s17 = inlined_call_operand.hbm [shape: f32[1,64], index: 17, kind: input, shape index: {}]   ;;  %s3257_s18 = inlined_call_operand.hbm [shape: f32[64,64], index: 18, kind: input, shape index: {}]   ;;  %s3258_s19 = inlined_call_operand.hbm [shape: f32[64,64], index: 19, kind: input, shape index: {}]   ;;  %s3259_s20 = inlined_call_operand.hbm [shape: f32[1,64], index: 20, kind: input, shape index: {}]   ;;  %s3260_s21 = inlined_call_operand.hbm [shape: f32[64,64], index: 21, kind: input, shape index: {}]   ;;  %s3261_s22 = inlined_call_operand.hbm [shape: f32[1,64], index: 22, kind: input, shape index: {}]   ;;  %s3262_s23 = inlined_call_operand.hbm [shape: f32[64,128], index: 23, kind: input, shape index: {}]   ;;  %s3263_s24 = inlined_call_operand.hbm [shape: f32[1,128], index: 24, kind: input, shape index: {}]   ;;  %s3264_s25 = inlined_call_operand.hbm [shape: f32[8,128], index: 25, kind: output, shape index: {}]  }
   0x1   :  { %3266 = sst [smem:[#allocation55_spill]] %s3239_s0 }
   0x2   :  { %3267 = sst [smem:[#allocation56_spill]] %s3240_s1 }
   0x3   :  { %3268 = sst [smem:[#allocation57_spill]] %s3241_s2 }
   0x4   :  { %3269 = sst [smem:[#allocation58_spill]] %s3242_s3 }
   0x5   :  { %3270 = sst [smem:[#allocation59_spill]] %s3243_s4 }
   0x6   :  { %3271 = sst [smem:[#allocation60_spill]] %s3244_s5 }
   0x7   :  { %3272 = sst [smem:[#allocation61_spill]] %s3245_s6 }
   0x8   :  { %3273 = sst [smem:[#allocation62_spill]] %s3246_s7 }
   0x9   :  { %3274 = sst [smem:[#allocation63_spill]] %s3247_s8 }
   0xa   :  { %3275 = sst [smem:[#allocation64_spill]] %s3248_s9 }
   0xb   :  { %3276 = sst [smem:[#allocation65_spill]] %s3253_s14 }
   0xc   :  { %3277 = sst [smem:[#allocation66_spill]] %s3263_s24 }
   0xd   :  { %3278 = sst [smem:[#allocation67_spill]] %s3264_s25 }
   0xe   :  { %30 = vsyncpa [#allocation3], 0 }
   0xf   :  { %31 = vsyncpa [#allocation6], 0 }
  0x10   :  { %32 = vsyncpa [#allocation9], 0 }
  0x11   :  { %33 = vsyncpa [#allocation12], 0 }
  0x12   :  { %34 = vsyncpa [#allocation15], 0 }
  0x13   :  { %35 = vsyncpa [#allocation18], 0 }
  0x14   :  { %36 = vsyncpa [#allocation21], 0 }
  0x15   :  { %37 = vsyncpa [#allocation24], 0 }
  0x16   :  { %38 = vsyncpa [#allocation27], 0 }
  0x17   :  { %39 = vsyncpa [#allocation30], 0 }
  0x18   :  { %40 = vsyncpa [#allocation33], 0 }
  0x19   :  { %41 = vsyncpa [#allocation36], 0 }
  0x1a   :  { %42 = vsyncpa [#allocation39], 0  ;;  %s3279_s6 = sld [smem:[#allocation56_spill]] }
  0x20   :  { %s60_s30 = sshll.u32 %s3279_s6, 4  ;;  %s61_s30 = int_to_ptr.hbm [resolvable:$true] %s60_s30 }
  0x21   :  { %43 = vsyncpa [#allocation4], 0  ;;  %s2859_s7 = smov [#allocation5]   ;;  %s3280_s8 = sld [smem:[#allocation58_spill]] }
  0x22   :  { %s62_s3 = sshll.u32 %s2859_s7, 4  ;;  %s2860_s4 = smov [#allocation8]   ;;  %s63_s3 = int_to_ptr.vmem [resolvable:$true] %s62_s3 }
  0x23   :  { %65 = dma.hbm_to_vmem [thread:$0]  %s61_s30, 128, %s63_s3, [#allocation6]  }
  0x24   :  { %s86_s28 = sshll.u32 %s2860_s4, 4  ;;  %s3281_s0 = sld [smem:[#allocation60_spill]]  ;;  %s87_s28 = int_to_ptr.vmem [resolvable:$true] %s86_s28 }
  0x25   :  { %s3282_s6 = sld [smem:[#allocation62_spill]]  ;;  %s2861_s14 = smov [#allocation11]  }
  0x26   :  { %s110_s24 = sshll.u32 %s2861_s14, 4  ;;  %s2862_s30 = smov [#allocation14]   ;;  %s111_s24 = int_to_ptr.vmem [resolvable:$true] %s110_s24 }
  0x27   :  { %s84_s27 = sshll.u32 %s3280_s8, 4  ;;  %s134_s3 = sshll.u32 %s2862_s30, 4  ;;  %s85_s27 = int_to_ptr.hbm [resolvable:$true] %s84_s27  ;;  %s135_s3 = int_to_ptr.vmem [resolvable:$true] %s134_s3 }
  0x28   :  { %89 = dma.hbm_to_vmem [thread:$0]  %s85_s27, 80, %s87_s28, [#allocation9]  }
  0x29   :  { %s3283_s8 = sld [smem:[#allocation64_spill]]  ;;  %s178_s28 = sshll.u32 %s3250_s11, 4  ;;  %s179_s28 = int_to_ptr.hbm [resolvable:$true] %s178_s28 }
  0x2a   :  { %s108_s25 = sshll.u32 %s3281_s0, 4  ;;  %s2863_s5 = smov [#allocation17]   ;;  %s109_s25 = int_to_ptr.hbm [resolvable:$true] %s108_s25 }
  0x2b   :  { %s132_s7 = sshll.u32 %s3282_s6, 4  ;;  %s156_s0 = sshll.u32 %s2863_s5, 4  ;;  %s133_s7 = int_to_ptr.hbm [resolvable:$true] %s132_s7  ;;  %s157_s0 = int_to_ptr.vmem [resolvable:$true] %s156_s0 }
  0x2c   :  { %113 = dma.hbm_to_vmem [thread:$0]  %s109_s25, 48, %s111_s24, [#allocation12]  }
  0x2d   :  { %137 = dma.hbm_to_vmem [thread:$0]  %s133_s7, 16, %s135_s3, [#allocation15]  }
  0x2e   :  { %s2864_s14 = smov [#allocation20]   ;;  %s200_s2 = sshll.u32 %s3252_s13, 4  ;;  %s201_s2 = int_to_ptr.hbm [resolvable:$true] %s200_s2 }
  0x2f   :  { %s154_s4 = sshll.u32 %s3283_s8, 4  ;;  %s180_s24 = sshll.u32 %s2864_s14, 4  ;;  %s155_s4 = int_to_ptr.hbm [resolvable:$true] %s154_s4  ;;  %s181_s24 = int_to_ptr.vmem [resolvable:$true] %s180_s24 }
  0x30   :  { %159 = dma.hbm_to_vmem [thread:$0]  %s155_s4, 16, %s157_s0, [#allocation18]  }
  0x31   :  { %183 = dma.hbm_to_vmem [thread:$0]  %s179_s28, 16, %s181_s24, [#allocation21]  }
  0x32   :  { %s224_s30 = sshll.u32 %s3255_s16, 4  ;;  %s2865_s3 = smov [#allocation23]   ;;  %s225_s30 = int_to_ptr.hbm [resolvable:$true] %s224_s30 }
  0x33   :  { %s202_s11 = sshll.u32 %s2865_s3, 4  ;;  %s2866_s26 = smov [#allocation26]   ;;  %s203_s11 = int_to_ptr.vmem [resolvable:$true] %s202_s11 }
  0x34   :  { %205 = dma.hbm_to_vmem [thread:$0]  %s201_s2, 16, %s203_s11, [#allocation24]  }
  0x35   :  { %s226_s1 = sshll.u32 %s2866_s26, 4  ;;  %s245_s13 = sshll.u32 %s3257_s18, 4  ;;  %s227_s1 = int_to_ptr.vmem [resolvable:$true] %s226_s1  ;;  %s246_s13 = int_to_ptr.hbm [resolvable:$true] %s245_s13 }
  0x36   :  { %229 = dma.hbm_to_vmem [thread:$0]  %s225_s30, 16, %s227_s1, [#allocation27]  }
  0x37   :  { %s2867_s9 = smov [#allocation29]   ;;  %s272_s16 = sshll.u32 %s3259_s20, 4  ;;  %s273_s16 = int_to_ptr.hbm [resolvable:$true] %s272_s16 }
  0x38   :  { %s247_s27 = sshll.u32 %s2867_s9, 4  ;;  %s2868_s0 = smov 128   ;;  %s248_s27 = int_to_ptr.vmem [resolvable:$true] %s247_s27 }
  0x39   :  { %s2869_s14 = smov 8   ;;  %s2870_s24 = smov [#allocation32]  }
  0x3a   :  { %253 = dma.hbm_to_vmem [thread:$0]  %s246_s13, 1024, %s248_s27, [#allocation30], %s2868_s0, %s2868_s0, %s2869_s14  }
  0x3b   :  { %s274_s25 = sshll.u32 %s2870_s24, 4  ;;  %s296_s18 = sshll.u32 %s3261_s22, 4  ;;  %s275_s25 = int_to_ptr.vmem [resolvable:$true] %s274_s25  ;;  %s297_s18 = int_to_ptr.hbm [resolvable:$true] %s296_s18 }
  0x3c   :  { %277 = dma.hbm_to_vmem [thread:$0]  %s273_s16, 16, %s275_s25, [#allocation33]  }
  0x3d   :  { %s3284_s30 = sld [smem:[#allocation55_spill]]  ;;  %s2871_s3 = smov [#allocation35]  }
  0x3e   :  { %s298_s11 = sshll.u32 %s2871_s3, 4  ;;  %s2872_s26 = smov [#allocation2]   ;;  %s299_s11 = int_to_ptr.vmem [resolvable:$true] %s298_s11 }
  0x3f   :  { %301 = dma.hbm_to_vmem [thread:$0]  %s297_s18, 16, %s299_s11, [#allocation36]  }
  0x40   :  { %s51_s1 = sshll.u32 %s2872_s26, 4  ;;  %s3285_s13 = sld [smem:[#allocation57_spill]]  ;;  %s52_s1 = int_to_ptr.vmem [resolvable:$true] %s51_s1 }
  0x41   :  { %s2873_s22 = smov [#allocation7]   ;;  %s3286_s16 = sld [smem:[#allocation59_spill]] }
  0x42   :  { %s72_s27 = sshll.u32 %s2873_s22, 4  ;;  %s2874_s25 = smov 640   ;;  %s73_s27 = int_to_ptr.vmem [resolvable:$true] %s72_s27 }
  0x43   :  { %s49_s20 = sshll.u32 %s3284_s30, 4  ;;  %s2875_s29 = smov 40   ;;  %s50_s20 = int_to_ptr.hbm [resolvable:$true] %s49_s20 }
  0x44   :  { %54 = dma.hbm_to_vmem [thread:$0]  %s50_s20, 512, %s52_s1, [#allocation3]  }
  0x45   :  { %s2876_s2 = smov [#allocation10]   ;;  %s2877_s6 = smov 384  }
  0x46   :  { %s70_s9 = sshll.u32 %s3285_s13, 4  ;;  %s96_s18 = sshll.u32 %s2876_s2, 4  ;;  %s71_s9 = int_to_ptr.hbm [resolvable:$true] %s70_s9  ;;  %s97_s18 = int_to_ptr.vmem [resolvable:$true] %s96_s18 }
  0x47   :  { %s94_s24 = sshll.u32 %s3286_s16, 4  ;;  %s2878_s7 = smov 24   ;;  %s95_s24 = int_to_ptr.hbm [resolvable:$true] %s94_s24 }
  0x48   :  { %78 = dma.hbm_to_vmem [thread:$0]  %s71_s9, 35840, %s73_s27, [#allocation6], %s2874_s25, %s2874_s25, %s2875_s29  }
  0x49   :  { %102 = dma.hbm_to_vmem [thread:$0]  %s95_s24, 18432, %s97_s18, [#allocation9], %s2877_s6, %s2877_s6, %s2878_s7  }
  0x4a   :  { %s3287_s20 = sld [smem:[#allocation61_spill]]  ;;  %s2879_s26 = smov [#allocation13]  }
  0x4b   :  { %s120_s1 = sshll.u32 %s2879_s26, 4  ;;  %s3288_s13 = sld [smem:[#allocation63_spill]]  ;;  %s121_s1 = int_to_ptr.vmem [resolvable:$true] %s120_s1 }
  0x4c   :  { %s2880_s9 = smov [#allocation16]   ;;  %s164_s16 = sshll.u32 %s3249_s10, 4  ;;  %s165_s16 = int_to_ptr.hbm [resolvable:$true] %s164_s16 }
  0x4d   :  { %s145_s27 = sshll.u32 %s2880_s9, 4  ;;  %s189_s29 = sshll.u32 %s3251_s12, 4  ;;  %s146_s27 = int_to_ptr.vmem [resolvable:$true] %s145_s27  ;;  %s190_s29 = int_to_ptr.hbm [resolvable:$true] %s189_s29 }
  0x4e   :  { %s2881_s2 = smov [#allocation19]   ;;  %s2882_s6 = smov [#allocation22]  }
  0x4f   :  { %s166_s18 = sshll.u32 %s2881_s2, 4  ;;  %s191_s7 = sshll.u32 %s2882_s6, 4  ;;  %s167_s18 = int_to_ptr.vmem [resolvable:$true] %s166_s18  ;;  %s192_s7 = int_to_ptr.vmem [resolvable:$true] %s191_s7 }
  0x50   :  { %s118_s11 = sshll.u32 %s3287_s20, 4  ;;  %s213_s10 = sshll.u32 %s3254_s15, 4  ;;  %s119_s11 = int_to_ptr.hbm [resolvable:$true] %s118_s11  ;;  %s214_s10 = int_to_ptr.hbm [resolvable:$true] %s213_s10 }
  0x51   :  { %s143_s22 = sshll.u32 %s3288_s13, 4  ;;  %s235_s12 = sshll.u32 %s3256_s17, 4  ;;  %s144_s22 = int_to_ptr.hbm [resolvable:$true] %s143_s22  ;;  %s236_s12 = int_to_ptr.hbm [resolvable:$true] %s235_s12 }
  0x52   :  { %126 = dma.hbm_to_vmem [thread:$0]  %s119_s11, 6144, %s121_s1, [#allocation12], %s2868_s0, %s2868_s0, %s2869_s14  }
  0x53   :  { %148 = dma.hbm_to_vmem [thread:$0]  %s144_s22, 16, %s146_s27, [#allocation15]  }
  0x54   :  { %172 = dma.hbm_to_vmem [thread:$0]  %s165_s16, 2048, %s167_s18, [#allocation18], %s2868_s0, %s2868_s0, %s2869_s14  }
  0x55   :  { %194 = dma.hbm_to_vmem [thread:$0]  %s190_s29, 16, %s192_s7, [#allocation21]  }
  0x56   :  { %s2883_s26 = smov [#allocation25]   ;;  %s2884_s8 = smov [#allocation28]  }
  0x57   :  { %s215_s1 = sshll.u32 %s2883_s26, 4  ;;  %s237_s4 = sshll.u32 %s2884_s8, 4  ;;  %s216_s1 = int_to_ptr.vmem [resolvable:$true] %s215_s1  ;;  %s238_s4 = int_to_ptr.vmem [resolvable:$true] %s237_s4 }
  0x58   :  { %218 = dma.hbm_to_vmem [thread:$0]  %s214_s10, 16, %s216_s1, [#allocation24]  }
  0x59   :  { %s258_s9 = sshll.u32 %s3258_s19, 4  ;;  %s282_s28 = sshll.u32 %s3260_s21, 4  ;;  %s259_s9 = int_to_ptr.hbm [resolvable:$true] %s258_s9  ;;  %s283_s28 = int_to_ptr.hbm [resolvable:$true] %s282_s28 }
  0x5a   :  { %240 = dma.hbm_to_vmem [thread:$0]  %s236_s12, 16, %s238_s4, [#allocation27]  }
  0x5b   :  { %s2885_s5 = smov [#allocation31]   ;;  %s2886_s16 = smov [#allocation34]  }
  0x5c   :  { %s260_s17 = sshll.u32 %s2885_s5, 4  ;;  %s284_s24 = sshll.u32 %s2886_s16, 4  ;;  %s261_s17 = int_to_ptr.vmem [resolvable:$true] %s260_s17  ;;  %s285_s24 = int_to_ptr.vmem [resolvable:$true] %s284_s24 }
  0x5d   :  { %266 = dma.hbm_to_vmem [thread:$0]  %s259_s9, 1024, %s261_s17, [#allocation30], %s2868_s0, %s2868_s0, %s2869_s14  }
  0x5e   :  { %s306_s19 = sshll.u32 %s3262_s23, 4  ;;  %s3289_s18 = sld [smem:[#allocation66_spill]]  ;;  %s307_s19 = int_to_ptr.hbm [resolvable:$true] %s306_s19 }
  0x5f   :  { %290 = dma.hbm_to_vmem [thread:$0]  %s283_s28, 1024, %s285_s24, [#allocation33], %s2868_s0, %s2868_s0, %s2869_s14  }
  0x60   :  { %s2887_s7 = smov [#allocation37]   ;;  %s2888_s3 = smov [#allocation38]  }
  0x61   :  { %s308_s30 = sshll.u32 %s2887_s7, 4  ;;  %s322_s23 = sshll.u32 %s2888_s3, 4  ;;  %s309_s30 = int_to_ptr.vmem [resolvable:$true] %s308_s30  ;;  %s323_s23 = int_to_ptr.vmem [resolvable:$true] %s322_s23 }
  0x62   :  { %314 = dma.hbm_to_vmem [thread:$0]  %s307_s19, 1024, %s309_s30, [#allocation36], %s2868_s0, %s2868_s0, %s2869_s14  }
  0x64   :  { %s320_s6 = sshll.u32 %s3289_s18, 4  ;;  %s321_s6 = int_to_ptr.hbm [resolvable:$true] %s320_s6 }
  0x65   :  { %325 = dma.hbm_to_vmem [thread:$0]  %s321_s6, 16, %s323_s23, [#allocation39]  }
  0x66   :  { %2831 = dma.done.wait [#allocation3], 512  }
  0x67   :  { %2832 = vsyncadd [#allocation3], 4294966784 }
  0x68   :  { %2833 = dma.done.wait [#allocation6], 35968  }
  0x69   :  { %2834 = vsyncadd [#allocation6], 4294931328 }
  0x6a   :  { %2835 = dma.done.wait [#allocation9], 18512  }
  0x6b   :  { %2836 = vsyncadd [#allocation9], 4294948784 }
  0x6c   :  { %2837 = dma.done.wait [#allocation12], 6192  }
  0x6d   :  { %2838 = vsyncadd [#allocation12], 4294961104 }
  0x6e   :  { %2839 = dma.done.wait [#allocation15], 32  }
  0x6f   :  { %2840 = vsyncadd [#allocation15], 4294967264 }
  0x70   :  { %2841 = dma.done.wait [#allocation18], 2064  }
  0x71   :  { %2842 = vsyncadd [#allocation18], 4294965232 }
  0x72   :  { %2843 = dma.done.wait [#allocation21], 32  }
  0x73   :  { %2844 = vsyncadd [#allocation21], 4294967264 }
  0x74   :  { %2845 = dma.done.wait [#allocation24], 32  }
  0x75   :  { %2846 = vsyncadd [#allocation24], 4294967264 }
  0x76   :  { %2847 = dma.done.wait [#allocation27], 32  }
  0x77   :  { %2848 = vsyncadd [#allocation27], 4294967264 }
  0x78   :  { %2849 = dma.done.wait [#allocation30], 2048  }
  0x79   :  { %2850 = vsyncadd [#allocation30], 4294965248 }
  0x7a   :  { %2851 = dma.done.wait [#allocation33], 1040  }
  0x7b   :  { %2852 = vsyncadd [#allocation33], 4294966256 }
  0x7c   :  { %2853 = dma.done.wait [#allocation36], 1040  }
  0x7d   :  { %2854 = vsyncadd [#allocation36], 4294966256 }
  0x7e   :  { %2855 = dma.done.wait [#allocation39], 16  }
  0x7f   :  { %2856 = vsyncadd [#allocation39], 4294967280  ;;  %v502_v0 = vld [vmem:[#allocation7 + $0x258] sm:$0xff]  ;;  %v497_v1 = vld [vmem:[#allocation7 + $0x230] sm:$0xff]  ;;  %vm723_vm0 = vcmask 1040384   ;;  %vm719_vm1 = vcmask 465920  }
  0x80   :  { %v582_v2 = vld [vmem:[#allocation7 + $0x4d8] sm:$0xff]  ;;  %739 = vmatpush.msra.mxu0 %v502_v0  ;;  %v577_v3 = vld [vmem:[#allocation7 + $0x4b0] sm:$0xff]  ;;  %v492_v4 = vld [vmem:[#allocation7 + $0x208] sm:$0xff]  ;;  %vm1650_vm3 = vcmask 64512   ;;  %s2889_s0 = smov 64   ;;  %vm1859_vm4 = vcmask 523264  }
  0x81   :  { %759 = vmatpush.msra.mxu1 %v582_v2  ;;  %v572_v5 = vld [vmem:[#allocation7 + $0x488] sm:$0xff]  ;;  %v662_v6 = vld [vmem:[#allocation7 + $0x758] sm:$0xff]  ;;  %v657_v7 = vld [vmem:[#allocation7 + $0x730] sm:$0xff]  ;;  %s3290_s20 = sld [smem:[#allocation65_spill]] }
  0x82   :  { %740 = vmatpush.msra.mxu0 %v497_v1  ;;  %v702_v8 = vld [vmem:[#allocation7 + $0x898] sm:$0x1]  ;;  %v487_v9 = vld [vmem:[#allocation7 + $0x1e0] sm:$0xff]  ;;  %779 = vmatpush.msra.mxu2 %v662_v6  ;;  %v652_v11 = vld [vmem:[#allocation7 + $0x708] sm:$0xff]  ;;  %s3291_s1 = sld [smem:[#allocation67_spill]] }
  0x83   :  { %760 = vmatpush.msra.mxu1 %v577_v3  ;;  %v567_v10 = vld [vmem:[#allocation7 + $0x460] sm:$0xff]  ;;  %2133 = vmatpush.msk.msra.mxu3 %vm723_vm0, %v702_v8  ;;  %v697_v12 = vld [vmem:[#allocation7 + $0x870] sm:$0xff]  ;;  %v482_v13 = vld [vmem:[#allocation7 + $0x1b8] sm:$0xff] }
  0x84   :  { %741 = vmatpush.msra.mxu0 %v492_v4  ;;  %780 = vmatpush.msra.mxu2 %v657_v7  ;;  %v562_v14 = vld [vmem:[#allocation7 + $0x438] sm:$0xff]  ;;  %v692_v15 = vld [vmem:[#allocation7 + $0x848] sm:$0xff]  ;;  %v647_v16 = vld [vmem:[#allocation7 + $0x6e0] sm:$0xff] }
  0x85   :  { %761 = vmatpush.msra.mxu1 %v572_v5  ;;  %808 = vmatpush.msra.mxu3 %v697_v12  ;;  %v687_v17 = vld [vmem:[#allocation7 + $0x820] sm:$0xff]  ;;  %v477_v18 = vld [vmem:[#allocation7 + $0x190] sm:$0xff]  ;;  %v642_v20 = vld [vmem:[#allocation7 + $0x6b8] sm:$0xff] }
  0x86   :  { %742 = vmatpush.msra.mxu0 %v487_v9  ;;  %781 = vmatpush.msra.mxu2 %v652_v11  ;;  %v557_v19 = vld [vmem:[#allocation7 + $0x410] sm:$0xff]  ;;  %v682_v21 = vld [vmem:[#allocation7 + $0x7f8] sm:$0xff]  ;;  %v472_v22 = vld [vmem:[#allocation7 + $0x168] sm:$0xff] }
  0x87   :  { %762 = vmatpush.msra.mxu1 %v567_v10  ;;  %809 = vmatpush.msra.mxu3 %v692_v15  ;;  %v552_v23 = vld [vmem:[#allocation7 + $0x3e8] sm:$0xff]  ;;  %v637_v24 = vld [vmem:[#allocation7 + $0x690] sm:$0xff]  ;;  %v467_v26 = vld [vmem:[#allocation7 + $0x140] sm:$0xff] }
  0x88   :  { %743 = vmatpush.msra.mxu0 %v482_v13  ;;  %782 = vmatpush.msra.mxu2 %v647_v16  ;;  %v677_v25 = vld [vmem:[#allocation7 + $0x7d0] sm:$0xff]  ;;  %v547_v27 = vld [vmem:[#allocation7 + $0x3c0] sm:$0xff]  ;;  %v632_v28 = vld [vmem:[#allocation7 + $0x668] sm:$0xff]  ;;  %s2111_s8 = sshll.u32 %s3291_s1, 4  ;;  %s2112_s8 = int_to_ptr.hbm [resolvable:$true] %s2111_s8 }
  0x89   :  { %763 = vmatpush.msra.mxu1 %v562_v14  ;;  %810 = vmatpush.msra.mxu3 %v687_v17  ;;  %v672_v29 = vld [vmem:[#allocation7 + $0x7a8] sm:$0xff]  ;;  %v462_v30 = vld [vmem:[#allocation7 + $0x118] sm:$0xff]  ;;  %v627_v32 = vld [vmem:[#allocation7 + $0x640] sm:$0xff] }
  0x8a   :  { %744 = vmatpush.msra.mxu0 %v477_v18  ;;  %783 = vmatpush.msra.mxu2 %v642_v20  ;;  %v542_v31 = vld [vmem:[#allocation7 + $0x398] sm:$0xff]  ;;  %v667_v33 = vld [vmem:[#allocation7 + $0x780] sm:$0xff]  ;;  %v457_v34 = vld [vmem:[#allocation7 + $0xf0] sm:$0xff] }
  0x8b   :  { %764 = vmatpush.msra.mxu1 %v557_v19  ;;  %811 = vmatpush.msra.mxu3 %v682_v21  ;;  %v537_v35 = vld [vmem:[#allocation7 + $0x370] sm:$0xff]  ;;  %v622_v36 = vld [vmem:[#allocation7 + $0x618] sm:$0xff]  ;;  %v503_v37 = vld [vmem:[#allocation7 + $0x260] sm:$0xff] }
  0x8c   :  { %745 = vmatpush.msra.mxu0 %v472_v22  ;;  %784 = vmatpush.msra.mxu2 %v637_v24  ;;  %v452_v38 = vld [vmem:[#allocation7 + $0xc8] sm:$0xff]  ;;  %v617_v40 = vld [vmem:[#allocation7 + $0x5f0] sm:$0xff]  ;;  %v498_v41 = vld [vmem:[#allocation7 + $0x238] sm:$0xff] }
  0x8d   :  { %765 = vmatpush.msra.mxu1 %v552_v23  ;;  %812 = vmatpush.msra.mxu3 %v677_v25  ;;  %v532_v39 = vld [vmem:[#allocation7 + $0x348] sm:$0xff]  ;;  %v447_v42 = vld [vmem:[#allocation7 + $0xa0] sm:$0xff]  ;;  %v493_v45 = vld [vmem:[#allocation7 + $0x210] sm:$0xff] }
  0x8e   :  { %746 = vmatpush.msra.mxu0 %v467_v26  ;;  %785 = vmatpush.msra.mxu2 %v632_v28  ;;  %v527_v43 = vld [vmem:[#allocation7 + $0x320] sm:$0xff]  ;;  %v612_v44 = vld [vmem:[#allocation7 + $0x5c8] sm:$0xff]  ;;  %v442_v46 = vld [vmem:[#allocation7 + $0x78] sm:$0xff] }
  0x8f   :  { %766 = vmatpush.msra.mxu1 %v547_v27  ;;  %813 = vmatpush.msra.mxu3 %v672_v29  ;;  %v522_v47 = vld [vmem:[#allocation7 + $0x2f8] sm:$0xff]  ;;  %v607_v48 = vld [vmem:[#allocation7 + $0x5a0] sm:$0xff]  ;;  %v488_v49 = vld [vmem:[#allocation7 + $0x1e8] sm:$0xff] }
  0x90   :  { %747 = vmatpush.msra.mxu0 %v462_v30  ;;  %786 = vmatpush.msra.mxu2 %v627_v32  ;;  %v437_v50 = vld [vmem:[#allocation7 + $0x50] sm:$0xff]  ;;  %v602_v52 = vld [vmem:[#allocation7 + $0x578] sm:$0xff]  ;;  %v483_v53 = vld [vmem:[#allocation7 + $0x1c0] sm:$0xff] }
  0x91   :  { %767 = vmatpush.msra.mxu1 %v542_v31  ;;  %814 = vmatpush.msra.mxu3 %v667_v33  ;;  %v517_v51 = vld [vmem:[#allocation7 + $0x2d0] sm:$0xff]  ;;  %v432_v54 = vld [vmem:[#allocation7 + $0x28] sm:$0xff]  ;;  %v478_v57 = vld [vmem:[#allocation7 + $0x198] sm:$0xff] }
  0x92   :  { %748 = vmatpush.msra.mxu0 %v457_v34  ;;  %787 = vmatpush.msra.mxu2 %v622_v36  ;;  %v512_v55 = vld [vmem:[#allocation7 + $0x2a8] sm:$0xff]  ;;  %v597_v56 = vld [vmem:[#allocation7 + $0x550] sm:$0xff]  ;;  %v427_v58 = vld [vmem:[#allocation7] sm:$0xff] }
  0x93   :  { %768 = vmatpush.msra.mxu1 %v537_v35  ;;  %819 = vmatpush.msrb.mxu3 %v503_v37  ;;  %v507_v59 = vld [vmem:[#allocation7 + $0x280] sm:$0xff]  ;;  %v592_v62 = vld [vmem:[#allocation7 + $0x528] sm:$0xff]  ;;  %v473_v63 = vld [vmem:[#allocation7 + $0x170] sm:$0xff] }
  0x94   :  { %749 = vmatpush.msra.mxu0 %v452_v38  ;;  %788 = vmatpush.msra.mxu2 %v617_v40  ;;  %v583_v60 = vld [vmem:[#allocation7 + $0x4e0] sm:$0xff]  ;;  %v578_v0 = vld [vmem:[#allocation7 + $0x4b8] sm:$0xff]  ;;  %v468_v3 = vld [vmem:[#allocation7 + $0x148] sm:$0xff] }
  0x95   :  { %769 = vmatpush.msra.mxu1 %v532_v39  ;;  %820 = vmatpush.msrb.mxu3 %v498_v41  ;;  %v663_v61 = vld [vmem:[#allocation7 + $0x760] sm:$0xff]  ;;  %v658_v1 = vld [vmem:[#allocation7 + $0x738] sm:$0xff]  ;;  %v573_v4 = vld [vmem:[#allocation7 + $0x490] sm:$0xff] }
  0x96   :  { %750 = vmatpush.msra.mxu0 %v447_v42  ;;  %789 = vmatpush.msra.mxu2 %v612_v44  ;;  %v587_v2 = vld [vmem:[#allocation7 + $0x500] sm:$0xff]  ;;  %v653_v5 = vld [vmem:[#allocation7 + $0x710] sm:$0xff]  ;;  %v568_v8 = vld [vmem:[#allocation7 + $0x468] sm:$0xff] }
  0x97   :  { %770 = vmatpush.msra.mxu1 %v527_v43  ;;  %821 = vmatpush.msrb.mxu3 %v493_v45  ;;  %v703_v6 = vld [vmem:[#allocation7 + $0x8a0] sm:$0x1]  ;;  %v648_v9 = vld [vmem:[#allocation7 + $0x6e8] sm:$0xff]  ;;  %v698_v10 = vld [vmem:[#allocation7 + $0x878] sm:$0xff] }
  0x98   :  { %751 = vmatpush.msra.mxu0 %v442_v46  ;;  %790 = vmatpush.msra.mxu2 %v607_v48  ;;  %v463_v7 = vld [vmem:[#allocation7 + $0x120] sm:$0xff]  ;;  %v458_v11 = vld [vmem:[#allocation7 + $0xf8] sm:$0xff]  ;;  %v693_v14 = vld [vmem:[#allocation7 + $0x850] sm:$0xff] }
  0x99   :  { %771 = vmatpush.msra.mxu1 %v522_v47  ;;  %822 = vmatpush.msrb.mxu3 %v488_v49  ;;  %v563_v12 = vld [vmem:[#allocation7 + $0x440] sm:$0xff]  ;;  %v453_v15 = vld [vmem:[#allocation7 + $0xd0] sm:$0xff]  ;;  %v558_v16 = vld [vmem:[#allocation7 + $0x418] sm:$0xff] }
  0x9a   :  { %752 = vmatpush.msra.mxu0 %v437_v50  ;;  %791 = vmatpush.msra.mxu2 %v602_v52  ;;  %v643_v13 = vld [vmem:[#allocation7 + $0x6c0] sm:$0xff]  ;;  %v638_v17 = vld [vmem:[#allocation7 + $0x698] sm:$0xff]  ;;  %v688_v18 = vld [vmem:[#allocation7 + $0x828] sm:$0xff] }
  0x9b   :  { %772 = vmatpush.msra.mxu1 %v517_v51  ;;  %823 = vmatpush.msrb.mxu3 %v483_v53  ;;  %v448_v19 = vld [vmem:[#allocation7 + $0xa8] sm:$0xff]  ;;  %v553_v20 = vld [vmem:[#allocation7 + $0x3f0] sm:$0xff]  ;;  %v683_v22 = vld [vmem:[#allocation7 + $0x800] sm:$0xff] }
  0x9c   :  { %753 = vmatpush.msra.mxu0 %v432_v54  ;;  %792 = vmatpush.msra.mxu2 %v597_v56  ;;  %v633_v21 = vld [vmem:[#allocation7 + $0x670] sm:$0xff]  ;;  %v548_v24 = vld [vmem:[#allocation7 + $0x3c8] sm:$0xff]  ;;  %v443_v25 = vld [vmem:[#allocation7 + $0x80] sm:$0xff] }
  0x9d   :  { %773 = vmatpush.msra.mxu1 %v512_v55  ;;  %824 = vmatpush.msrb.mxu3 %v478_v57  ;;  %v3113_v23 = vld [vmem:[#allocation2 + $0x18] sm:$0xff]  ;;  %v628_v26 = vld [vmem:[#allocation7 + $0x648] sm:$0xff]  ;;  %v678_v27 = vld [vmem:[#allocation7 + $0x7d8] sm:$0xff] }
  0x9e   :  { %754 = vmatpush.msra.mxu0 %v427_v58  ;;  %793 = vmatpush.msra.mxu2 %v592_v62  ;;  %v543_v28 = vld [vmem:[#allocation7 + $0x3a0] sm:$0xff]  ;;  %v438_v29 = vld [vmem:[#allocation7 + $0x58] sm:$0xff]  ;;  %v673_v31 = vld [vmem:[#allocation7 + $0x7b0] sm:$0xff] }
  0x9f   :  { %774 = vmatpush.msra.mxu1 %v507_v59  ;;  %825 = vmatpush.msrb.mxu3 %v473_v63  ;;  %v623_v30 = vld [vmem:[#allocation7 + $0x620] sm:$0xff]  ;;  %v538_v32 = vld [vmem:[#allocation7 + $0x378] sm:$0xff]  ;;  %v3117_v33 = vld [vmem:[#allocation2 + $0x10] sm:$0xff] }
  0xa0   :  { %839 = vmatpush.msrb.mxu0 %v583_v60  ;;  %794 = vmatpush.msra.mxu2 %v587_v2  ;;  %v433_v34 = vld [vmem:[#allocation7 + $0x30] sm:$0xff]  ;;  %v618_v36 = vld [vmem:[#allocation7 + $0x5f8] sm:$0xff]  ;;  %v668_v37 = vld [vmem:[#allocation7 + $0x788] sm:$0xff] }
  0xa1   :  { %859 = vmatpush.msrb.mxu1 %v663_v61  ;;  %826 = vmatpush.msrb.mxu3 %v468_v3  ;;  %v533_v35 = vld [vmem:[#allocation7 + $0x350] sm:$0xff]  ;;  %v3119_v38 = vld [vmem:[#allocation2] sm:$0xff]  ;;  %v504_v39 = vld [vmem:[#allocation7 + $0x268] sm:$0xff] }
  0xa2   :  { %840 = vmatpush.msrb.mxu0 %v578_v0  ;;  %2135 = vmatpush.msk.msrb.mxu2 %vm723_vm0, %v703_v6  ;;  %v428_v40 = vld [vmem:[#allocation7 + $0x8] sm:$0xff]  ;;  %v613_v42 = vld [vmem:[#allocation7 + $0x5d0] sm:$0xff]  ;;  %v3122_v43 = vld [vmem:[#allocation2 + $0x8] sm:$0xff] }
  0xa3   :  { %860 = vmatpush.msrb.mxu1 %v658_v1  ;;  %827 = vmatpush.msrb.mxu3 %v463_v7  ;;  %v528_v41 = vld [vmem:[#allocation7 + $0x328] sm:$0xff]  ;;  %v499_v44 = vld [vmem:[#allocation7 + $0x240] sm:$0xff]  ;;  %v494_v48 = vld [vmem:[#allocation7 + $0x218] sm:$0xff] }
  0xa4   :  { %841 = vmatpush.msrb.mxu0 %v573_v4  ;;  %888 = vmatpush.msrb.mxu2 %v698_v10  ;;  %v584_v45 = vld [vmem:[#allocation7 + $0x4e8] sm:$0xff]  ;;  %v523_v46 = vld [vmem:[#allocation7 + $0x300] sm:$0xff]  ;;  %v518_v50 = vld [vmem:[#allocation7 + $0x2d8] sm:$0xff] }
  0xa5   :  { %861 = vmatpush.msrb.mxu1 %v653_v5  ;;  %828 = vmatpush.msrb.mxu3 %v458_v11  ;;  %v608_v47 = vld [vmem:[#allocation7 + $0x5a8] sm:$0xff]  ;;  %v579_v49 = vld [vmem:[#allocation7 + $0x4c0] sm:$0xff]  ;;  %v489_v52 = vld [vmem:[#allocation7 + $0x1f0] sm:$0xff] }
  0xa6   :  { %842 = vmatpush.msrb.mxu0 %v568_v8  ;;  %889 = vmatpush.msrb.mxu2 %v693_v14  ;;  %v603_v51 = vld [vmem:[#allocation7 + $0x580] sm:$0xff]  ;;  %v574_v53 = vld [vmem:[#allocation7 + $0x498] sm:$0xff]  ;;  %v513_v54 = vld [vmem:[#allocation7 + $0x2b0] sm:$0xff] }
  0xa7   :  { %862 = vmatpush.msrb.mxu1 %v648_v9  ;;  %829 = vmatpush.msrb.mxu3 %v453_v15  ;;  %v598_v55 = vld [vmem:[#allocation7 + $0x558] sm:$0xff]  ;;  %v484_v56 = vld [vmem:[#allocation7 + $0x1c8] sm:$0xff]  ;;  %v569_v57 = vld [vmem:[#allocation7 + $0x470] sm:$0xff] }
  0xa8   :  { %843 = vmatpush.msrb.mxu0 %v563_v12  ;;  %890 = vmatpush.msrb.mxu2 %v688_v18  ;;  %v508_v58 = vld [vmem:[#allocation7 + $0x288] sm:$0xff]  ;;  %v593_v59 = vld [vmem:[#allocation7 + $0x530] sm:$0xff]  ;;  %v479_v60 = vld [vmem:[#allocation7 + $0x1a0] sm:$0xff] }
  0xa9   :  { %863 = vmatpush.msrb.mxu1 %v643_v13  ;;  %830 = vmatpush.msrb.mxu3 %v448_v19  ;;  %v564_v61 = vld [vmem:[#allocation7 + $0x448] sm:$0xff]  ;;  %v474_v0 = vld [vmem:[#allocation7 + $0x178] sm:$0xff]  ;;  %v559_v1 = vld [vmem:[#allocation7 + $0x420] sm:$0xff] }
  0xaa   :  { %844 = vmatpush.msrb.mxu0 %v558_v16  ;;  %891 = vmatpush.msrb.mxu2 %v683_v22  ;;  %v664_v62 = vld [vmem:[#allocation7 + $0x768] sm:$0xff]  ;;  %v659_v2 = vld [vmem:[#allocation7 + $0x740] sm:$0xff]  ;;  %v469_v3 = vld [vmem:[#allocation7 + $0x150] sm:$0xff] }
  0xab   :  { %864 = vmatpush.msrb.mxu1 %v638_v17  ;;  %2134 = vmatmul.msk.f32.vlgmr.msra.gmra.mxu3 %vm719_vm1, %v3113_v23  ;;  %v588_v63 = vld [vmem:[#allocation7 + $0x508] sm:$0xff]  ;;  %v554_v4 = vld [vmem:[#allocation7 + $0x3f8] sm:$0xff]  ;;  %v549_v8 = vld [vmem:[#allocation7 + $0x3d0] sm:$0xff] }
  0xac   :  { %845 = vmatpush.msrb.mxu0 %v553_v20  ;;  %831 = vmatpush.msrb.mxu3 %v443_v25  ;;  %v704_v5 = vld [vmem:[#allocation7 + $0x8a8] sm:$0x1]  ;;  %v654_v6 = vld [vmem:[#allocation7 + $0x718] sm:$0xff]  ;;  %v699_v9 = vld [vmem:[#allocation7 + $0x880] sm:$0xff] }
  0xad   :  { %865 = vmatpush.msrb.mxu1 %v633_v21  ;;  %892 = vmatpush.msrb.mxu2 %v678_v27  ;;  %v464_v7 = vld [vmem:[#allocation7 + $0x128] sm:$0xff]  ;;  %v649_v10 = vld [vmem:[#allocation7 + $0x6f0] sm:$0xff]  ;;  %v459_v11 = vld [vmem:[#allocation7 + $0x100] sm:$0xff] }
  0xae   :  { %846 = vmatpush.msrb.mxu0 %v548_v24  ;;  %832 = vmatpush.msrb.mxu3 %v438_v29  ;;  %v544_v12 = vld [vmem:[#allocation7 + $0x3a8] sm:$0xff]  ;;  %v694_v13 = vld [vmem:[#allocation7 + $0x858] sm:$0xff]  ;;  %v539_v16 = vld [vmem:[#allocation7 + $0x380] sm:$0xff] }
  0xaf   :  { %866 = vmatpush.msrb.mxu1 %v628_v26  ;;  %893 = vmatpush.msrb.mxu2 %v673_v31  ;;  %v644_v14 = vld [vmem:[#allocation7 + $0x6c8] sm:$0xff]  ;;  %v454_v15 = vld [vmem:[#allocation7 + $0xd8] sm:$0xff]  ;;  %v689_v17 = vld [vmem:[#allocation7 + $0x830] sm:$0xff] }
  0xb0   :  { %847 = vmatpush.msrb.mxu0 %v543_v28  ;;  %795 = vmatmul.f32.vlgmr.msra.gmra.mxu2 %v3117_v33  ;;  %v639_v18 = vld [vmem:[#allocation7 + $0x6a0] sm:$0xff]  ;;  %v449_v19 = vld [vmem:[#allocation7 + $0xb0] sm:$0xff]  ;;  %v534_v20 = vld [vmem:[#allocation7 + $0x358] sm:$0xff] }
  0xb1   :  { %867 = vmatpush.msrb.mxu1 %v623_v30  ;;  %833 = vmatpush.msrb.mxu3 %v433_v34  ;;  %v684_v21 = vld [vmem:[#allocation7 + $0x808] sm:$0xff]  ;;  %v634_v22 = vld [vmem:[#allocation7 + $0x678] sm:$0xff]  ;;  %v529_v25 = vld [vmem:[#allocation7 + $0x330] sm:$0xff] }
  0xb2   :  { %848 = vmatpush.msrb.mxu0 %v538_v32  ;;  %894 = vmatpush.msrb.mxu2 %v668_v37  ;;  %v444_v24 = vld [vmem:[#allocation7 + $0x88] sm:$0xff]  ;;  %v679_v26 = vld [vmem:[#allocation7 + $0x7e0] sm:$0xff]  ;;  %v629_v27 = vld [vmem:[#allocation7 + $0x650] sm:$0xff] }
  0xb3   :  { %868 = vmatpush.msrb.mxu1 %v618_v36  ;;  %755 = vmatmul.f32.vlgmr.msra.gmra.mxu0 %v3119_v38  ;;  %v439_v28 = vld [vmem:[#allocation7 + $0x60] sm:$0xff]  ;;  %v524_v29 = vld [vmem:[#allocation7 + $0x308] sm:$0xff]  ;;  %v674_v30 = vld [vmem:[#allocation7 + $0x7b8] sm:$0xff] }
  0xb4   :  { %849 = vmatpush.msrb.mxu0 %v533_v35  ;;  %899 = vmatpush.msra.mxu2 %v504_v39  ;;  %v624_v31 = vld [vmem:[#allocation7 + $0x628] sm:$0xff]  ;;  %v434_v32 = vld [vmem:[#allocation7 + $0x38] sm:$0xff]  ;;  %v519_v34 = vld [vmem:[#allocation7 + $0x2e0] sm:$0xff] }
  0xb5   :  { %834 = vmatpush.msrb.mxu3 %v428_v40  ;;  %869 = vmatpush.msrb.mxu1 %v613_v42  ;;  %v669_v35 = vld [vmem:[#allocation7 + $0x790] sm:$0xff]  ;;  %v619_v36 = vld [vmem:[#allocation7 + $0x600] sm:$0xff]  ;;  %v514_v39 = vld [vmem:[#allocation7 + $0x2b8] sm:$0xff] }
  0xb6   :  { %850 = vmatpush.msrb.mxu0 %v528_v41  ;;  %835 = vmatmul.f32.vlgmr.msrb.gmra.mxu3 %v3119_v38  ;;  %v429_v37 = vld [vmem:[#allocation7 + $0x10] sm:$0xff]  ;;  %v614_v40 = vld [vmem:[#allocation7 + $0x5d8] sm:$0xff] }
  0xb7   :  { %775 = vmatmul.f32.vlgmr.msra.gmra.mxu1 %v3122_v43  ;;  %900 = vmatpush.msra.mxu2 %v499_v44  ;;  %v509_v41 = vld [vmem:[#allocation7 + $0x290] sm:$0xff] }
  0xb8   :  { %919 = vmatpush.msra.mxu3 %v584_v45  ;;  %851 = vmatpush.msrb.mxu0 %v523_v46  ;;  %v585_v42 = vld [vmem:[#allocation7 + $0x4f0] sm:$0xff]  ;;  %v580_v46 = vld [vmem:[#allocation7 + $0x4c8] sm:$0xff] }
  0xb9   :  { %870 = vmatpush.msrb.mxu1 %v608_v47  ;;  %901 = vmatpush.msra.mxu2 %v494_v48  ;;  %v609_v44 = vld [vmem:[#allocation7 + $0x5b0] sm:$0xff]  ;;  %v604_v47 = vld [vmem:[#allocation7 + $0x588] sm:$0xff] }
  0xba   :  { %920 = vmatpush.msra.mxu3 %v579_v49  ;;  %852 = vmatpush.msrb.mxu0 %v518_v50  ;;  %v665_v45 = vld [vmem:[#allocation7 + $0x770] sm:$0xff]  ;;  %v660_v49 = vld [vmem:[#allocation7 + $0x748] sm:$0xff]  ;;  %v575_v50 = vld [vmem:[#allocation7 + $0x4a0] sm:$0xff] }
  0xbb   :  { %871 = vmatpush.msrb.mxu1 %v603_v51  ;;  %902 = vmatpush.msra.mxu2 %v489_v52  ;;  %v505_v48 = vld [vmem:[#allocation7 + $0x270] sm:$0xff]  ;;  %v599_v51 = vld [vmem:[#allocation7 + $0x560] sm:$0xff]  ;;  %v500_v52 = vld [vmem:[#allocation7 + $0x248] sm:$0xff] }
  0xbc   :  { %921 = vmatpush.msra.mxu3 %v574_v53  ;;  %853 = vmatpush.msrb.mxu0 %v513_v54  ;;  %v655_v53 = vld [vmem:[#allocation7 + $0x720] sm:$0xff]  ;;  %v570_v54 = vld [vmem:[#allocation7 + $0x478] sm:$0xff] }
  0xbd   :  { %872 = vmatpush.msrb.mxu1 %v598_v55  ;;  %2136 = vmatmul.msk.f32.vlgmr.msrb.gmra.mxu2 %vm719_vm1, %v3113_v23  ;;  %v594_v55 = vld [vmem:[#allocation7 + $0x538] sm:$0xff] }
  0xbe   :  { %903 = vmatpush.msra.mxu2 %v484_v56  ;;  %922 = vmatpush.msra.mxu3 %v569_v57  ;;  %v495_v56 = vld [vmem:[#allocation7 + $0x220] sm:$0xff]  ;;  %v650_v57 = vld [vmem:[#allocation7 + $0x6f8] sm:$0xff] }
  0xbf   :  { %854 = vmatpush.msrb.mxu0 %v508_v58  ;;  %873 = vmatpush.msrb.mxu1 %v593_v59  ;;  %v565_v58 = vld [vmem:[#allocation7 + $0x450] sm:$0xff] }
  0xc0   :  { %855 = vmatmul.f32.vlgmr.msrb.gmra.mxu0 %v3122_v43  ;;  %904 = vmatpush.msra.mxu2 %v479_v60  ;;  %v589_v59 = vld [vmem:[#allocation7 + $0x510] sm:$0xff]  ;;  %v490_v60 = vld [vmem:[#allocation7 + $0x1f8] sm:$0xff] }
  0xc1   :  { %923 = vmatpush.msra.mxu3 %v564_v61  ;;  %939 = vmatpush.msra.mxu0 %v664_v62  ;;  %v645_v61 = vld [vmem:[#allocation7 + $0x6d0] sm:$0xff]  ;;  %v560_v62 = vld [vmem:[#allocation7 + $0x428] sm:$0xff] }
  0xc2   :  { %874 = vmatpush.msrb.mxu1 %v588_v63  ;;  %905 = vmatpush.msra.mxu2 %v474_v0  ;;  %v485_v63 = vld [vmem:[#allocation7 + $0x1d0] sm:$0xff]  ;;  %v640_v0 = vld [vmem:[#allocation7 + $0x6a8] sm:$0xff] }
  0xc3   :  { %875 = vmatmul.f32.vlgmr.msrb.gmra.mxu1 %v3117_v33  ;;  %924 = vmatpush.msra.mxu3 %v559_v1  ;;  %v705_v1 = vld [vmem:[#allocation7 + $0x8b0] sm:$0x1] }
  0xc4   :  { %940 = vmatpush.msra.mxu0 %v659_v2  ;;  %906 = vmatpush.msra.mxu2 %v469_v3  ;;  %v555_v2 = vld [vmem:[#allocation7 + $0x400] sm:$0xff]  ;;  %v480_v3 = vld [vmem:[#allocation7 + $0x1a8] sm:$0xff] }
  0xc5   :  { %925 = vmatpush.msra.mxu3 %v554_v4  ;;  %2137 = vmatpush.msk.msra.mxu1 %vm723_vm0, %v704_v5  ;;  %v635_v4 = vld [vmem:[#allocation7 + $0x680] sm:$0xff]  ;;  %v700_v5 = vld [vmem:[#allocation7 + $0x888] sm:$0xff] }
  0xc6   :  { %941 = vmatpush.msra.mxu0 %v654_v6  ;;  %907 = vmatpush.msra.mxu2 %v464_v7  ;;  %v550_v6 = vld [vmem:[#allocation7 + $0x3d8] sm:$0xff]  ;;  %v475_v7 = vld [vmem:[#allocation7 + $0x180] sm:$0xff] }
  0xc7   :  { %926 = vmatpush.msra.mxu3 %v549_v8  ;;  %968 = vmatpush.msra.mxu1 %v699_v9  ;;  %v630_v8 = vld [vmem:[#allocation7 + $0x658] sm:$0xff]  ;;  %v695_v9 = vld [vmem:[#allocation7 + $0x860] sm:$0xff] }
  0xc8   :  { %942 = vmatpush.msra.mxu0 %v649_v10  ;;  %908 = vmatpush.msra.mxu2 %v459_v11  ;;  %v545_v10 = vld [vmem:[#allocation7 + $0x3b0] sm:$0xff]  ;;  %v470_v11 = vld [vmem:[#allocation7 + $0x158] sm:$0xff] }
  0xc9   :  { %927 = vmatpush.msra.mxu3 %v544_v12  ;;  %969 = vmatpush.msra.mxu1 %v694_v13  ;;  %v625_v12 = vld [vmem:[#allocation7 + $0x630] sm:$0xff]  ;;  %v690_v13 = vld [vmem:[#allocation7 + $0x838] sm:$0xff] }
  0xca   :  { %943 = vmatpush.msra.mxu0 %v644_v14  ;;  %909 = vmatpush.msra.mxu2 %v454_v15  ;;  %v540_v14 = vld [vmem:[#allocation7 + $0x388] sm:$0xff]  ;;  %v465_v15 = vld [vmem:[#allocation7 + $0x130] sm:$0xff] }
  0xcb   :  { %928 = vmatpush.msra.mxu3 %v539_v16  ;;  %970 = vmatpush.msra.mxu1 %v689_v17  ;;  %v620_v16 = vld [vmem:[#allocation7 + $0x608] sm:$0xff]  ;;  %v685_v17 = vld [vmem:[#allocation7 + $0x810] sm:$0xff] }
  0xcc   :  { %944 = vmatpush.msra.mxu0 %v639_v18  ;;  %910 = vmatpush.msra.mxu2 %v449_v19  ;;  %v535_v18 = vld [vmem:[#allocation7 + $0x360] sm:$0xff]  ;;  %v460_v19 = vld [vmem:[#allocation7 + $0x108] sm:$0xff] }
  0xcd   :  { %929 = vmatpush.msra.mxu3 %v534_v20  ;;  %971 = vmatpush.msra.mxu1 %v684_v21  ;;  %v615_v20 = vld [vmem:[#allocation7 + $0x5e0] sm:$0xff]  ;;  %v680_v21 = vld [vmem:[#allocation7 + $0x7e8] sm:$0xff] }
  0xce   :  { %945 = vmatpush.msra.mxu0 %v634_v22  ;;  %911 = vmatpush.msra.mxu2 %v444_v24  ;;  %v530_v22 = vld [vmem:[#allocation7 + $0x338] sm:$0xff]  ;;  %v455_v24 = vld [vmem:[#allocation7 + $0xe0] sm:$0xff] }
  0xcf   :  { %930 = vmatpush.msra.mxu3 %v529_v25  ;;  %972 = vmatpush.msra.mxu1 %v679_v26  ;;  %v610_v25 = vld [vmem:[#allocation7 + $0x5b8] sm:$0xff]  ;;  %v675_v26 = vld [vmem:[#allocation7 + $0x7c0] sm:$0xff] }
  0xd0   :  { %946 = vmatpush.msra.mxu0 %v629_v27  ;;  %912 = vmatpush.msra.mxu2 %v439_v28  ;;  %v525_v27 = vld [vmem:[#allocation7 + $0x310] sm:$0xff]  ;;  %v450_v28 = vld [vmem:[#allocation7 + $0xb8] sm:$0xff] }
  0xd1   :  { %931 = vmatpush.msra.mxu3 %v524_v29  ;;  %973 = vmatpush.msra.mxu1 %v674_v30  ;;  %v605_v29 = vld [vmem:[#allocation7 + $0x590] sm:$0xff]  ;;  %v670_v30 = vld [vmem:[#allocation7 + $0x798] sm:$0xff] }
  0xd2   :  { %947 = vmatpush.msra.mxu0 %v624_v31  ;;  %913 = vmatpush.msra.mxu2 %v434_v32  ;;  %v520_v31 = vld [vmem:[#allocation7 + $0x2e8] sm:$0xff]  ;;  %v506_v32 = vld [vmem:[#allocation7 + $0x278] sm:$0xff] }
  0xd3   :  { %932 = vmatpush.msra.mxu3 %v519_v34  ;;  %974 = vmatpush.msra.mxu1 %v669_v35  ;;  %v600_v34 = vld [vmem:[#allocation7 + $0x568] sm:$0xff]  ;;  %v445_v35 = vld [vmem:[#allocation7 + $0x90] sm:$0xff] }
  0xd4   :  { %948 = vmatpush.msra.mxu0 %v619_v36  ;;  %914 = vmatpush.msra.mxu2 %v429_v37  ;;  %v515_v36 = vld [vmem:[#allocation7 + $0x2c0] sm:$0xff]  ;;  %v501_v37 = vld [vmem:[#allocation7 + $0x250] sm:$0xff] }
  0xd5   :  { %933 = vmatpush.msra.mxu3 %v514_v39  ;;  %915 = vmatmul.f32.vlgmr.msra.gmra.mxu2 %v3119_v38  ;;  %v595_v39 = vld [vmem:[#allocation7 + $0x540] sm:$0xff] }
  0xd6   :  { %949 = vmatpush.msra.mxu0 %v614_v40  ;;  %2138 = vmatmul.msk.f32.vlgmr.msra.gmra.mxu1 %vm719_vm1, %v3113_v23  ;;  %v440_v40 = vld [vmem:[#allocation7 + $0x68] sm:$0xff] }
  0xd7   :  { %934 = vmatpush.msra.mxu3 %v509_v41  ;;  %999 = vmatpush.msrb.mxu2 %v585_v42  ;;  %v510_v41 = vld [vmem:[#allocation7 + $0x298] sm:$0xff]  ;;  %v496_v42 = vld [vmem:[#allocation7 + $0x228] sm:$0xff] }
  0xd8   :  { %950 = vmatpush.msra.mxu0 %v609_v44  ;;  %935 = vmatmul.f32.vlgmr.msra.gmra.mxu3 %v3122_v43  ;;  %v590_v44 = vld [vmem:[#allocation7 + $0x518] sm:$0xff] }
  0xd9   :  { %1019 = vmatpush.msrb.mxu3 %v665_v45  ;;  %1000 = vmatpush.msrb.mxu2 %v580_v46  ;;  %v666_v45 = vld [vmem:[#allocation7 + $0x778] sm:$0xff] }
  0xda   :  { %951 = vmatpush.msra.mxu0 %v604_v47  ;;  %979 = vmatpush.msrb.mxu1 %v505_v48  ;;  %v706_v46 = vld [vmem:[#allocation7 + $0x8b8] sm:$0x1]  ;;  %v661_v47 = vld [vmem:[#allocation7 + $0x750] sm:$0xff] }
  0xdb   :  { %1020 = vmatpush.msrb.mxu3 %v660_v49  ;;  %1001 = vmatpush.msrb.mxu2 %v575_v50  ;;  %v701_v48 = vld [vmem:[#allocation7 + $0x890] sm:$0xff]  ;;  %v435_v49 = vld [vmem:[#allocation7 + $0x40] sm:$0xff]  ;;  %v656_v50 = vld [vmem:[#allocation7 + $0x728] sm:$0xff] }
  0xdc   :  { %952 = vmatpush.msra.mxu0 %v599_v51  ;;  %980 = vmatpush.msrb.mxu1 %v500_v52  ;;  %v491_v51 = vld [vmem:[#allocation7 + $0x200] sm:$0xff]  ;;  %v696_v52 = vld [vmem:[#allocation7 + $0x868] sm:$0xff] }
  0xdd   :  { %1021 = vmatpush.msrb.mxu3 %v655_v53  ;;  %1002 = vmatpush.msrb.mxu2 %v570_v54  ;;  %v430_v53 = vld [vmem:[#allocation7 + $0x18] sm:$0xff]  ;;  %v651_v54 = vld [vmem:[#allocation7 + $0x700] sm:$0xff] }
  0xde   :  { %953 = vmatpush.msra.mxu0 %v594_v55  ;;  %981 = vmatpush.msrb.mxu1 %v495_v56  ;;  %v691_v55 = vld [vmem:[#allocation7 + $0x840] sm:$0xff]  ;;  %v486_v56 = vld [vmem:[#allocation7 + $0x1d8] sm:$0xff] }
  0xdf   :  { %1022 = vmatpush.msrb.mxu3 %v650_v57  ;;  %1003 = vmatpush.msrb.mxu2 %v565_v58  ;;  %v646_v57 = vld [vmem:[#allocation7 + $0x6d8] sm:$0xff] }
  0xe0   :  { %954 = vmatpush.msra.mxu0 %v589_v59  ;;  %982 = vmatpush.msrb.mxu1 %v490_v60  ;;  %v586_v58 = vld [vmem:[#allocation7 + $0x4f8] sm:$0xff]  ;;  %v481_v60 = vld [vmem:[#allocation7 + $0x1b0] sm:$0xff] }
  0xe1   :  { %955 = vmatmul.f32.vlgmr.msra.gmra.mxu0 %v3117_v33  ;;  %1023 = vmatpush.msrb.mxu3 %v645_v61  ;;  %v686_v59 = vld [vmem:[#allocation7 + $0x818] sm:$0xff]  ;;  %v641_v61 = vld [vmem:[#allocation7 + $0x6b0] sm:$0xff] }
  0xe2   :  { %1004 = vmatpush.msrb.mxu2 %v560_v62  ;;  %983 = vmatpush.msrb.mxu1 %v485_v63  ;;  %v581_v62 = vld [vmem:[#allocation7 + $0x4d0] sm:$0xff] }
  0xe3   :  { %1024 = vmatpush.msrb.mxu3 %v640_v0  ;;  %2139 = vmatpush.msk.msrb.mxu0 %vm723_vm0, %v705_v1  ;;  %v681_v63 = vld [vmem:[#allocation7 + $0x7f0] sm:$0xff]  ;;  %v476_v0 = vld [vmem:[#allocation7 + $0x188] sm:$0xff] }
  0xe4   :  { %1005 = vmatpush.msrb.mxu2 %v555_v2  ;;  %984 = vmatpush.msrb.mxu1 %v480_v3  ;;  %v636_v1 = vld [vmem:[#allocation7 + $0x688] sm:$0xff] }
  0xe5   :  { %1025 = vmatpush.msrb.mxu3 %v635_v4  ;;  %1048 = vmatpush.msrb.mxu0 %v700_v5  ;;  %v576_v2 = vld [vmem:[#allocation7 + $0x4a8] sm:$0xff]  ;;  %v631_v4 = vld [vmem:[#allocation7 + $0x660] sm:$0xff] }
  0xe6   :  { %1006 = vmatpush.msrb.mxu2 %v550_v6  ;;  %985 = vmatpush.msrb.mxu1 %v475_v7  ;;  %v676_v3 = vld [vmem:[#allocation7 + $0x7c8] sm:$0xff]  ;;  %v471_v5 = vld [vmem:[#allocation7 + $0x160] sm:$0xff] }
  0xe7   :  { %1026 = vmatpush.msrb.mxu3 %v630_v8  ;;  %1049 = vmatpush.msrb.mxu0 %v695_v9  ;;  %v671_v6 = vld [vmem:[#allocation7 + $0x7a0] sm:$0xff]  ;;  %v1199_v8 = vld [vmem:[#allocation10 + $0x168] sm:$0xff]  ;;  %v626_v9 = vld [vmem:[#allocation7 + $0x638] sm:$0xff] }
  0xe8   :  { %1007 = vmatpush.msrb.mxu2 %v545_v10  ;;  %986 = vmatpush.msrb.mxu1 %v470_v11  ;;  %v571_v7 = vld [vmem:[#allocation7 + $0x480] sm:$0xff]  ;;  %v466_v10 = vld [vmem:[#allocation7 + $0x138] sm:$0xff] }
  0xe9   :  { %1027 = vmatpush.msrb.mxu3 %v625_v12  ;;  %1050 = vmatpush.msrb.mxu0 %v690_v13  ;;  %v566_v11 = vld [vmem:[#allocation7 + $0x458] sm:$0xff]  ;;  %v621_v13 = vld [vmem:[#allocation7 + $0x610] sm:$0xff] }
  0xea   :  { %1008 = vmatpush.msrb.mxu2 %v540_v14  ;;  %987 = vmatpush.msrb.mxu1 %v465_v15  ;;  %v1196_v12 = vld [vmem:[#allocation10 + $0x150] sm:$0xff] }
  0xeb   :  { %1028 = vmatpush.msrb.mxu3 %v620_v16  ;;  %1051 = vmatpush.msrb.mxu0 %v685_v17  ;;  %v461_v14 = vld [vmem:[#allocation7 + $0x110] sm:$0xff]  ;;  %v1193_v16 = vld [vmem:[#allocation10 + $0x138] sm:$0xff]  ;;  %v616_v17 = vld [vmem:[#allocation7 + $0x5e8] sm:$0xff] }
  0xec   :  { %1009 = vmatpush.msrb.mxu2 %v535_v18  ;;  %988 = vmatpush.msrb.mxu1 %v460_v19  ;;  %v561_v15 = vld [vmem:[#allocation7 + $0x430] sm:$0xff]  ;;  %v456_v18 = vld [vmem:[#allocation7 + $0xe8] sm:$0xff] }
  0xed   :  { %1029 = vmatpush.msrb.mxu3 %v615_v20  ;;  %1052 = vmatpush.msrb.mxu0 %v680_v21  ;;  %v556_v19 = vld [vmem:[#allocation7 + $0x408] sm:$0xff]  ;;  %v611_v21 = vld [vmem:[#allocation7 + $0x5c0] sm:$0xff] }
  0xee   :  { %1010 = vmatpush.msrb.mxu2 %v530_v22  ;;  %989 = vmatpush.msrb.mxu1 %v455_v24  ;;  %v1190_v20 = vld [vmem:[#allocation10 + $0x120] sm:$0xff] }
  0xef   :  { %1030 = vmatpush.msrb.mxu3 %v610_v25  ;;  %1053 = vmatpush.msrb.mxu0 %v675_v26  ;;  %v451_v22 = vld [vmem:[#allocation7 + $0xc0] sm:$0xff]  ;;  %v1187_v25 = vld [vmem:[#allocation10 + $0x108] sm:$0xff]  ;;  %v606_v26 = vld [vmem:[#allocation7 + $0x598] sm:$0xff] }
  0xf0   :  { %1011 = vmatpush.msrb.mxu2 %v525_v27  ;;  %990 = vmatpush.msrb.mxu1 %v450_v28  ;;  %v551_v24 = vld [vmem:[#allocation7 + $0x3e0] sm:$0xff]  ;;  %v446_v27 = vld [vmem:[#allocation7 + $0x98] sm:$0xff] }
  0xf1   :  { %1031 = vmatpush.msrb.mxu3 %v605_v29  ;;  %1054 = vmatpush.msrb.mxu0 %v670_v30  ;;  %v546_v28 = vld [vmem:[#allocation7 + $0x3b8] sm:$0xff]  ;;  %v601_v30 = vld [vmem:[#allocation7 + $0x570] sm:$0xff] }
  0xf2   :  { %1012 = vmatpush.msrb.mxu2 %v520_v31  ;;  %991 = vmatpush.msrb.mxu1 %v445_v35  ;;  %v1184_v29 = vld [vmem:[#allocation10 + $0xf0] sm:$0xff]  ;;  %v596_v35 = vld [vmem:[#allocation7 + $0x548] sm:$0xff] }
  0xf3   :  { %1059 = vmatpush.msra.mxu0 %v506_v32  ;;  %1032 = vmatpush.msrb.mxu3 %v600_v34  ;;  %v441_v31 = vld [vmem:[#allocation7 + $0x70] sm:$0xff]  ;;  %v1181_v34 = vld [vmem:[#allocation10 + $0xd8] sm:$0xff] }
  0xf4   :  { %1013 = vmatpush.msrb.mxu2 %v515_v36  ;;  %992 = vmatpush.msrb.mxu1 %v440_v40  ;;  %v541_v32 = vld [vmem:[#allocation7 + $0x390] sm:$0xff]  ;;  %v1178_v36 = vld [vmem:[#allocation10 + $0xc0] sm:$0xff] }
  0xf5   :  { %1060 = vmatpush.msra.mxu0 %v501_v37  ;;  %1033 = vmatpush.msrb.mxu3 %v595_v39  ;;  %v591_v37 = vld [vmem:[#allocation7 + $0x520] sm:$0xff]  ;;  %v436_v39 = vld [vmem:[#allocation7 + $0x48] sm:$0xff] }
  0xf6   :  { %1014 = vmatpush.msrb.mxu2 %v510_v41  ;;  %993 = vmatpush.msrb.mxu1 %v435_v49  ;;  %v536_v40 = vld [vmem:[#allocation7 + $0x368] sm:$0xff]  ;;  %v1200_v41 = vld [vmem:[#allocation10 + $0x170] sm:$0xff]  ;;  %v1169_v49 = vld [vmem:[#allocation10 + $0x78] sm:$0xff] }
  0xf7   :  { %1061 = vmatpush.msra.mxu0 %v496_v42  ;;  %1034 = vmatpush.msrb.mxu3 %v590_v44  ;;  %v1175_v42 = vld [vmem:[#allocation10 + $0xa8] sm:$0xff]  ;;  %v1197_v44 = vld [vmem:[#allocation10 + $0x158] sm:$0xff] }
  0xf8   :  { %1099 = vmatpush.msra.mxu2 %v666_v45  ;;  %1035 = vmatmul.f32.vlgmr.msrb.gmra.mxu3 %v3117_v33  ;;  %v431_v45 = vld [vmem:[#allocation7 + $0x20] sm:$0xff] }
  0xf9   :  { %2141 = vmatpush.msk.msra.mxu3 %vm723_vm0, %v706_v46  ;;  %1015 = vmatmul.f32.vlgmr.msrb.gmra.mxu2 %v3122_v43  ;;  %v531_v46 = vld [vmem:[#allocation7 + $0x340] sm:$0xff] }
  0xfa   :  { %1100 = vmatpush.msra.mxu2 %v661_v47  ;;  %1062 = vmatpush.msra.mxu0 %v491_v51  ;;  %v1172_v47 = vld [vmem:[#allocation10 + $0x90] sm:$0xff]  ;;  %v1191_v51 = vld [vmem:[#allocation10 + $0x128] sm:$0xff] }
  0xfb   :  { %1128 = vmatpush.msra.mxu3 %v701_v48  ;;  %994 = vmatpush.msrb.mxu1 %v430_v53  ;;  %v1194_v48 = vld [vmem:[#allocation10 + $0x140] sm:$0xff] }
  0xfc   :  { %1101 = vmatpush.msra.mxu2 %v656_v50  ;;  %995 = vmatmul.f32.vlgmr.msrb.gmra.mxu1 %v3119_v38  ;;  %v1247_v50 = vld [vmem:[#allocation10 + $0x2e8] sm:$0xff]  ;;  %v1166_v53 = vld [vmem:[#allocation10 + $0x60] sm:$0xff] }
  0xfd   :  { %1129 = vmatpush.msra.mxu3 %v696_v52  ;;  %1063 = vmatpush.msra.mxu0 %v486_v56  ;;  %v526_v52 = vld [vmem:[#allocation7 + $0x318] sm:$0xff]  ;;  %v521_v56 = vld [vmem:[#allocation7 + $0x2f0] sm:$0xff] }
  0xfe   :  { %1102 = vmatpush.msra.mxu2 %v651_v54  ;;  %1079 = vmatpush.msra.mxu1 %v586_v58  ;;  %v1244_v54 = vld [vmem:[#allocation10 + $0x2d0] sm:$0xff]  ;;  %v1241_v58 = vld [vmem:[#allocation10 + $0x2b8] sm:$0xff] }
  0xff   :  { %1130 = vmatpush.msra.mxu3 %v691_v55  ;;  %1064 = vmatpush.msra.mxu0 %v481_v60  ;;  %v1188_v55 = vld [vmem:[#allocation10 + $0x110] sm:$0xff] }
 0x100   :  { %1103 = vmatpush.msra.mxu2 %v646_v57  ;;  %1080 = vmatpush.msra.mxu1 %v581_v62  ;;  %v1163_v57 = vld [vmem:[#allocation10 + $0x48] sm:$0xff]  ;;  %v1160_v60 = vld [vmem:[#allocation10 + $0x30] sm:$0xff]  ;;  %v1182_v62 = vld [vmem:[#allocation10 + $0xe0] sm:$0xff] }
 0x101   :  { %1131 = vmatpush.msra.mxu3 %v686_v59  ;;  %1065 = vmatpush.msra.mxu0 %v476_v0  ;;  %v1185_v59 = vld [vmem:[#allocation10 + $0xf8] sm:$0xff] }
 0x102   :  { %1104 = vmatpush.msra.mxu2 %v641_v61  ;;  %1081 = vmatpush.msra.mxu1 %v576_v2  ;;  %v1238_v61 = vld [vmem:[#allocation10 + $0x2a0] sm:$0xff]  ;;  %v1157_v0 = vld [vmem:[#allocation10 + $0x18] sm:$0xff]  ;;  %v1235_v2 = vld [vmem:[#allocation10 + $0x288] sm:$0xff] }
 0x103   :  { %1132 = vmatpush.msra.mxu3 %v681_v63  ;;  %2140 = vmatmul.msk.f32.vlgmr.msrb.gmra.mxu0 %vm719_vm1, %v3113_v23  ;;  %v511_v63 = vld [vmem:[#allocation7 + $0x2a0] sm:$0xff] }
 0x104   :  { %1105 = vmatpush.msra.mxu2 %v636_v1  ;;  %1066 = vmatpush.msra.mxu0 %v471_v5  ;;  %v1179_v1 = vld [vmem:[#allocation10 + $0xc8] sm:$0xff]  ;;  %v1176_v5 = vld [vmem:[#allocation10 + $0xb0] sm:$0xff] }
 0x105   :  { %1133 = vmatpush.msra.mxu3 %v676_v3  ;;  %1082 = vmatpush.msra.mxu1 %v571_v7  ;;  %v1154_v3 = vld [vmem:[#allocation10] sm:$0xff]  ;;  %v1292_v7 = vld [vmem:[#allocation10 + $0x450] sm:$0xff] }
 0x106   :  { %1106 = vmatpush.msra.mxu2 %v631_v4  ;;  %1067 = vmatpush.msra.mxu0 %v466_v10  ;;  %v1248_v4 = vld [vmem:[#allocation10 + $0x2f0] sm:$0xff]  ;;  %v1289_v10 = vld [vmem:[#allocation10 + $0x438] sm:$0xff] }
 0x107   :  { %1134 = vmatpush.msra.mxu3 %v671_v6  ;;  %1083 = vmatpush.msra.mxu1 %v566_v11  ;;  %v1232_v6 = vld [vmem:[#allocation10 + $0x270] sm:$0xff]  ;;  %v1242_v11 = vld [vmem:[#allocation10 + $0x2c0] sm:$0xff] }
 0x108   :  { %1107 = vmatpush.msra.mxu2 %v626_v9  ;;  %1068 = vmatpush.msra.mxu0 %v461_v14  ;;  %v1229_v9 = vld [vmem:[#allocation10 + $0x258] sm:$0xff]  ;;  %v1239_v14 = vld [vmem:[#allocation10 + $0x2a8] sm:$0xff] }
 0x109   :  { %1306 = vmatpush.msrb.mxu3 %v1199_v8  ;;  %1084 = vmatpush.msra.mxu1 %v561_v15  ;;  %v1245_v8 = vld [vmem:[#allocation10 + $0x2d8] sm:$0xff]  ;;  %v1167_v15 = vld [vmem:[#allocation10 + $0x68] sm:$0xff] }
 0x10a   :  { %1108 = vmatpush.msra.mxu2 %v621_v13  ;;  %1069 = vmatpush.msra.mxu0 %v456_v18  ;;  %v1226_v13 = vld [vmem:[#allocation10 + $0x240] sm:$0xff]  ;;  %v3149_v18 = vld [vmem:[#allocation8] sm:$0x1f] }
 0x10b   :  { %1307 = vmatpush.msrb.mxu3 %v1196_v12  ;;  %1085 = vmatpush.msra.mxu1 %v556_v19  ;;  %v1170_v12 = vld [vmem:[#allocation10 + $0x80] sm:$0xff]  ;;  %v1236_v19 = vld [vmem:[#allocation10 + $0x290] sm:$0xff] }
 0x10c   :  { %1109 = vmatpush.msra.mxu2 %v616_v17  ;;  %1070 = vmatpush.msra.mxu0 %v451_v22  ;;  %v1283_v17 = vld [vmem:[#allocation10 + $0x408] sm:$0xff]  ;;  %v1280_v22 = vld [vmem:[#allocation10 + $0x3f0] sm:$0xff] }
 0x10d   :  { %1308 = vmatpush.msrb.mxu3 %v1193_v16  ;;  %1086 = vmatpush.msra.mxu1 %v551_v24  ;;  %v1223_v16 = vld [vmem:[#allocation10 + $0x228] sm:$0xff]  ;;  %v1233_v24 = vld [vmem:[#allocation10 + $0x278] sm:$0xff] }
 0x10e   :  { %1110 = vmatpush.msra.mxu2 %v611_v21  ;;  %1071 = vmatpush.msra.mxu0 %v446_v27  ;;  %v1220_v21 = vld [vmem:[#allocation10 + $0x210] sm:$0xff]  ;;  %v1217_v27 = vld [vmem:[#allocation10 + $0x1f8] sm:$0xff] }
 0x10f   :  { %1309 = vmatpush.msrb.mxu3 %v1190_v20  ;;  %1087 = vmatpush.msra.mxu1 %v546_v28  ;;  %v1164_v20 = vld [vmem:[#allocation10 + $0x50] sm:$0xff]  ;;  %v1277_v28 = vld [vmem:[#allocation10 + $0x3d8] sm:$0xff] }
 0x110   :  { %1111 = vmatpush.msra.mxu2 %v606_v26  ;;  %1072 = vmatpush.msra.mxu0 %v441_v31  ;;  %v709_v26 = vperm.slane %v3149_v18, 0  ;;  %v1158_v31 = vld [vmem:[#allocation10 + $0x20] sm:$0xff] }
 0x111   :  { %1310 = vmatpush.msrb.mxu3 %v1187_v25  ;;  %1088 = vmatpush.msra.mxu1 %v541_v32  ;;  %v1161_v25 = vld [vmem:[#allocation10 + $0x38] sm:$0xff]  ;;  %v1214_v32 = vld [vmem:[#allocation10 + $0x1e0] sm:$0xff] }
 0x112   :  { %1112 = vmatpush.msra.mxu2 %v601_v30  ;;  %1073 = vmatpush.msra.mxu0 %v436_v39  ;;  %v1230_v30 = vld [vmem:[#allocation10 + $0x260] sm:$0xff] }
 0x113   :  { %1311 = vmatpush.msrb.mxu3 %v1184_v29  ;;  %1089 = vmatpush.msra.mxu1 %v536_v40  ;;  %v1249_v40 = vld [vmem:[#allocation10 + $0x2f8] sm:$0xff] }
 0x114   :  { %1113 = vmatpush.msra.mxu2 %v596_v35  ;;  %1074 = vmatpush.msra.mxu0 %v431_v45 }
 0x115   :  { %1312 = vmatpush.msrb.mxu3 %v1181_v34  ;;  %1090 = vmatpush.msra.mxu1 %v531_v46  ;;  %v1274_v34 = vld [vmem:[#allocation10 + $0x3c0] sm:$0xff] }
 0x116   :  { %1114 = vmatpush.msra.mxu2 %v591_v37  ;;  %2142 = vmatmul.msk.f32.vlgmr.msra.gmra.mxu3 %vm719_vm1, %v3113_v23  ;;  %v516_v23 = vld [vmem:[#allocation7 + $0x2c8] sm:$0xff] }
 0x117   :  { %1313 = vmatpush.msrb.mxu3 %v1178_v36  ;;  %1326 = vmatpush.msrb.mxu0 %v1247_v50  ;;  %v1227_v36 = vld [vmem:[#allocation10 + $0x248] sm:$0xff]  ;;  %v1221_v50 = vld [vmem:[#allocation10 + $0x218] sm:$0xff] }
 0x118   :  { %1366 = vmatpush.msrb.mxu2 %v1200_v41  ;;  %1091 = vmatpush.msra.mxu1 %v526_v52  ;;  %v1155_v37 = vld [vmem:[#allocation10 + $0x8] sm:$0xff]  ;;  %v710_v52 = vperm.slane %v3149_v18, 1 }
 0x119   :  { %1314 = vmatpush.msrb.mxu3 %v1175_v42  ;;  %1327 = vmatpush.msrb.mxu0 %v1244_v54  ;;  %v1211_v41 = vld [vmem:[#allocation10 + $0x1c8] sm:$0xff]  ;;  %v1224_v42 = vld [vmem:[#allocation10 + $0x230] sm:$0xff]  ;;  %v1205_v54 = vld [vmem:[#allocation10 + $0x198] sm:$0xff] }
 0x11a   :  { %1367 = vmatpush.msrb.mxu2 %v1197_v44  ;;  %1092 = vmatpush.msra.mxu1 %v521_v56  ;;  %v1271_v44 = vld [vmem:[#allocation10 + $0x3a8] sm:$0xff]  ;;  %v1218_v56 = vld [vmem:[#allocation10 + $0x200] sm:$0xff] }
 0x11b   :  { %1315 = vmatpush.msrb.mxu3 %v1172_v47  ;;  %1115 = vmatmul.f32.vlgmr.msra.gmra.mxu2 %v3117_v33  ;;  %v1295_v33 = vld [vmem:[#allocation10 + $0x468] sm:$0xff]  ;;  %v1246_v47 = vld [vmem:[#allocation10 + $0x2e0] sm:$0xff] }
 0x11c   :  { %1368 = vmatpush.msrb.mxu2 %v1194_v48  ;;  %1328 = vmatpush.msrb.mxu0 %v1241_v58  ;;  %v1208_v48 = vld [vmem:[#allocation10 + $0x1b0] sm:$0xff] }
 0x11d   :  { %1316 = vmatpush.msrb.mxu3 %v1169_v49  ;;  %1093 = vmatpush.msra.mxu1 %v516_v23  ;;  %v1240_v58 = vld [vmem:[#allocation10 + $0x2b0] sm:$0xff] }
 0x11e   :  { %1369 = vmatpush.msrb.mxu2 %v1191_v51  ;;  %1075 = vmatmul.f32.vlgmr.msra.gmra.mxu0 %v3119_v38  ;;  %v1173_v38 = vld [vmem:[#allocation10 + $0x98] sm:$0xff]  ;;  %v1268_v51 = vld [vmem:[#allocation10 + $0x390] sm:$0xff] }
 0x11f   :  { %1317 = vmatpush.msrb.mxu3 %v1166_v53  ;;  %1329 = vmatpush.msrb.mxu0 %v1238_v61  ;;  %v1243_v53 = vld [vmem:[#allocation10 + $0x2c8] sm:$0xff] }
 0x120   :  { %1370 = vmatpush.msrb.mxu2 %v1188_v55  ;;  %1094 = vmatpush.msra.mxu1 %v511_v63  ;;  %v1215_v61 = vld [vmem:[#allocation10 + $0x1e8] sm:$0xff] }
 0x121   :  { %1318 = vmatpush.msrb.mxu3 %v1163_v57  ;;  %1095 = vmatmul.f32.vlgmr.msra.gmra.mxu1 %v3122_v43  ;;  %v1286_v43 = vld [vmem:[#allocation10 + $0x420] sm:$0xff]  ;;  %v1265_v57 = vld [vmem:[#allocation10 + $0x378] sm:$0xff] }
 0x122   :  { %1371 = vmatpush.msrb.mxu2 %v1185_v59  ;;  %1330 = vmatpush.msrb.mxu0 %v1235_v2  ;;  %v1202_v59 = vld [vmem:[#allocation10 + $0x180] sm:$0xff] }
 0x123   :  { %1319 = vmatpush.msrb.mxu3 %v1160_v60  ;;  %1346 = vmatpush.msrb.mxu1 %v1295_v33  ;;  %v1259_v33 = vld [vmem:[#allocation10 + $0x348] sm:$0xff] }
 0x124   :  { %1372 = vmatpush.msrb.mxu2 %v1182_v62  ;;  %1331 = vmatpush.msrb.mxu0 %v1232_v6  ;;  %v1262_v62 = vld [vmem:[#allocation10 + $0x360] sm:$0xff] }
 0x125   :  { %1320 = vmatpush.msrb.mxu3 %v1157_v0  ;;  %1347 = vmatpush.msrb.mxu1 %v1292_v7  ;;  %v1237_v0 = vld [vmem:[#allocation10 + $0x298] sm:$0xff] }
 0x126   :  { %1373 = vmatpush.msrb.mxu2 %v1179_v1  ;;  %1332 = vmatpush.msrb.mxu0 %v1229_v9  ;;  %v1296_v1 = vld [vmem:[#allocation10 + $0x470] sm:$0xff] }
 0x127   :  { %1321 = vmatpush.msrb.mxu3 %v1154_v3  ;;  %1348 = vmatpush.msrb.mxu1 %v1289_v10  ;;  %v1212_v3 = vld [vmem:[#allocation10 + $0x1d0] sm:$0xff]  ;;  %v1231_v10 = vld [vmem:[#allocation10 + $0x268] sm:$0xff] }
 0x128   :  { %1374 = vmatpush.msrb.mxu2 %v1176_v5  ;;  %1333 = vmatpush.msrb.mxu0 %v1226_v13  ;;  %v1293_v5 = vld [vmem:[#allocation10 + $0x458] sm:$0xff] }
 0x129   :  { %1386 = vmatpush.msra.mxu3 %v1248_v4  ;;  %1349 = vmatpush.msrb.mxu1 %v1286_v43  ;;  %v1234_v4 = vld [vmem:[#allocation10 + $0x280] sm:$0xff]  ;;  %v1253_v13 = vld [vmem:[#allocation10 + $0x318] sm:$0xff] }
 0x12a   :  { %1375 = vmatpush.msrb.mxu2 %v1173_v38  ;;  %1334 = vmatpush.msrb.mxu0 %v1223_v16  ;;  %v1256_v38 = vld [vmem:[#allocation10 + $0x330] sm:$0xff]  ;;  %v1287_v16 = vld [vmem:[#allocation10 + $0x428] sm:$0xff] }
 0x12b   :  { %1387 = vmatpush.msra.mxu3 %v1245_v8  ;;  %1350 = vmatpush.msrb.mxu1 %v1283_v17  ;;  %v1209_v8 = vld [vmem:[#allocation10 + $0x1b8] sm:$0xff] }
 0x12c   :  { %1376 = vmatpush.msrb.mxu2 %v1170_v12  ;;  %1335 = vmatpush.msrb.mxu0 %v1220_v21  ;;  %v1206_v12 = vld [vmem:[#allocation10 + $0x1a0] sm:$0xff]  ;;  %v1225_v21 = vld [vmem:[#allocation10 + $0x238] sm:$0xff] }
 0x12d   :  { %1388 = vmatpush.msra.mxu3 %v1242_v11  ;;  %1351 = vmatpush.msrb.mxu1 %v1280_v22  ;;  %v1290_v11 = vld [vmem:[#allocation10 + $0x440] sm:$0xff]  ;;  %v1284_v22 = vld [vmem:[#allocation10 + $0x410] sm:$0xff] }
 0x12e   :  { %1377 = vmatpush.msrb.mxu2 %v1167_v15  ;;  %v816_v29 = vpop.f32.mrf.mxu3  ;;  %1336 = vmatpush.msrb.mxu0 %v1217_v27  ;;  %v1228_v15 = vld [vmem:[#allocation10 + $0x250] sm:$0xff]  ;;  %v1281_v27 = vld [vmem:[#allocation10 + $0x3f8] sm:$0xff] }
 0x12f   :  { %1389 = vmatpush.msra.mxu3 %v1239_v14  ;;  %1352 = vmatpush.msrb.mxu1 %v1277_v28 }
 0x130   :  { %1378 = vmatpush.msrb.mxu2 %v1164_v20  ;;  %v756_v35 = vpop.f32.mrf.mxu0  ;;  %1337 = vmatpush.msrb.mxu0 %v1214_v32  ;;  %v1250_v20 = vld [vmem:[#allocation10 + $0x300] sm:$0xff]  ;;  %v1219_v32 = vld [vmem:[#allocation10 + $0x208] sm:$0xff] }
 0x131   :  { %1390 = vmatpush.msra.mxu3 %v1236_v19  ;;  %v757_v39 = vadd.f32 %v756_v35, %v709_v26  ;;  %1353 = vmatpush.msrb.mxu1 %v1274_v34  ;;  %v1203_v19 = vld [vmem:[#allocation10 + $0x188] sm:$0xff]  ;;  %v1222_v26 = vld [vmem:[#allocation10 + $0x220] sm:$0xff] }
 0x132   :  { %1379 = vmatpush.msrb.mxu2 %v1161_v25  ;;  %1338 = vmatpush.msrb.mxu0 %v1211_v41  ;;  %v1201_v25 = vld [vmem:[#allocation10 + $0x178] sm:$0xff]  ;;  %v1278_v34 = vld [vmem:[#allocation10 + $0x3e0] sm:$0xff] }
 0x133   :  { %1391 = vmatpush.msra.mxu3 %v1233_v24  ;;  %v796_v46 = vpop.f32.mrf.mxu2  ;;  %1354 = vmatpush.msrb.mxu1 %v1271_v44  ;;  %v1213_v41 = vld [vmem:[#allocation10 + $0x1d8] sm:$0xff] }
 0x134   :  { %1380 = vmatpush.msrb.mxu2 %v1158_v31  ;;  %v776_v45 = vpop.f32.mrf.mxu1  ;;  %1339 = vmatpush.msrb.mxu0 %v1208_v48  ;;  %v1189_v44 = vld [vmem:[#allocation10 + $0x118] sm:$0xff] }
 0x135   :  { %1392 = vmatpush.msra.mxu3 %v1230_v30  ;;  %v777_v49 = vadd.f32 %v776_v45, %v757_v39  ;;  %1355 = vmatpush.msrb.mxu1 %v1268_v51  ;;  %v1198_v30 = vld [vmem:[#allocation10 + $0x160] sm:$0xff]  ;;  %v1275_v39 = vld [vmem:[#allocation10 + $0x3c8] sm:$0xff]  ;;  %v1297_v45 = vld [vmem:[#allocation10 + $0x478] sm:$0xff] }
 0x136   :  { %1381 = vmatpush.msrb.mxu2 %v1155_v37  ;;  %1340 = vmatpush.msrb.mxu0 %v1205_v54  ;;  %v1216_v37 = vld [vmem:[#allocation10 + $0x1f0] sm:$0xff]  ;;  %v1269_v48 = vld [vmem:[#allocation10 + $0x398] sm:$0xff]  ;;  %v1294_v51 = vld [vmem:[#allocation10 + $0x460] sm:$0xff] }
 0x137   :  { %1393 = vmatpush.msra.mxu3 %v1227_v36  ;;  %v797_v55 = vadd.f32 %v796_v46, %v777_v49  ;;  %1356 = vmatpush.msrb.mxu1 %v1265_v57  ;;  %v1195_v36 = vld [vmem:[#allocation10 + $0x148] sm:$0xff]  ;;  %v1210_v46 = vld [vmem:[#allocation10 + $0x1c0] sm:$0xff]  ;;  %v1204_v57 = vld [vmem:[#allocation10 + $0x190] sm:$0xff] }
 0x138   :  { %1446 = vmatpush.msra.mxu2 %v1249_v40  ;;  %1341 = vmatpush.msrb.mxu0 %v1202_v59  ;;  %v1192_v40 = vld [vmem:[#allocation10 + $0x130] sm:$0xff]  ;;  %v1186_v49 = vld [vmem:[#allocation10 + $0x100] sm:$0xff] }
 0x139   :  { %1394 = vmatpush.msra.mxu3 %v1224_v42  ;;  %v817_v23 = vadd.f32 %v816_v29, %v797_v55  ;;  %v836_v60 = vpop.f32.mrf.mxu3  ;;  %1357 = vmatpush.msrb.mxu1 %v1262_v62  ;;  %v1272_v42 = vld [vmem:[#allocation10 + $0x3b0] sm:$0xff]  ;;  %v1266_v54 = vld [vmem:[#allocation10 + $0x380] sm:$0xff]  ;;  %v1183_v55 = vld [vmem:[#allocation10 + $0xe8] sm:$0xff]  ;;  %v711_v62 = vperm.slane %v3149_v18, 2 }
 0x13a   :  { %1447 = vmatpush.msra.mxu2 %v1246_v47  ;;  %v837_v63 = vadd.f32 %v836_v60, %v710_v52  ;;  %1406 = vmatpush.msra.mxu0 %v1296_v1  ;;  %v1207_v52 = vld [vmem:[#allocation10 + $0x1a8] sm:$0xff]  ;;  %v1180_v59 = vld [vmem:[#allocation10 + $0xd0] sm:$0xff] }
 0x13b   :  { %1395 = vmatpush.msra.mxu3 %v1221_v50  ;;  %v1139_v2 = vsub.f32 0.0, %v817_v23  ;;  %1358 = vmatpush.msrb.mxu1 %v1259_v33  ;;  %v1288_v23 = vld [vmem:[#allocation10 + $0x430] sm:$0xff]  ;;  %v1174_v33 = vld [vmem:[#allocation10 + $0xa0] sm:$0xff] }
 0x13c   :  { %1448 = vmatpush.msra.mxu2 %v1243_v53  ;;  %1407 = vmatpush.msra.mxu0 %v1293_v5  ;;  %v1260_v60 = vld [vmem:[#allocation10 + $0x350] sm:$0xff]  ;;  %v1279_v5 = vld [vmem:[#allocation10 + $0x3e8] sm:$0xff] }
 0x13d   :  { %1396 = vmatpush.msra.mxu3 %v1218_v56  ;;  %v1142_v6 = vmul.f32 1.442695, %v1139_v2  ;;  %v856_v7 = vpop.f32.mrf.mxu0  ;;  %1359 = vmatpush.msrb.mxu1 %v1256_v38  ;;  %v1291_v56 = vld [vmem:[#allocation10 + $0x448] sm:$0xff]  ;;  %v1276_v38 = vld [vmem:[#allocation10 + $0x3d0] sm:$0xff] }
 0x13e   :  { %1449 = vmatpush.msra.mxu2 %v1240_v58  ;;  %v857_v9 = vadd.f32 %v856_v7, %v837_v63  ;;  %1408 = vmatpush.msra.mxu0 %v1290_v11  ;;  %v1263_v58 = vld [vmem:[#allocation10 + $0x368] sm:$0xff]  ;;  %v1285_v63 = vld [vmem:[#allocation10 + $0x418] sm:$0xff]  ;;  %v1168_v11 = vld [vmem:[#allocation10 + $0x70] sm:$0xff] }
 0x13f   :  { %1397 = vmatpush.msra.mxu3 %v1215_v61  ;;  %2195 = vpow2.f32 %v1142_v6  ;;  %1360 = vmatpush.msrb.mxu1 %v1253_v13  ;;  %v1177_v61 = vld [vmem:[#allocation10 + $0xb8] sm:$0xff]  ;;  %v1254_v6 = vld [vmem:[#allocation10 + $0x320] sm:$0xff]  ;;  %v1171_v7 = vld [vmem:[#allocation10 + $0x88] sm:$0xff] }
 0x140   :  { %1450 = vmatpush.msra.mxu2 %v1237_v0  ;;  %v876_v43 = vpop.f32.mrf.mxu1  ;;  %v896_v14 = vpop.f32.mrf.mxu2  ;;  %1409 = vmatpush.msra.mxu0 %v1287_v16  ;;  %v1282_v0 = vld [vmem:[#allocation10 + $0x400] sm:$0xff] }
 0x141   :  { %1398 = vmatpush.msra.mxu3 %v1212_v3  ;;  %v877_v17 = vadd.f32 %v876_v43, %v857_v9  ;;  %1361 = vmatpush.msrb.mxu1 %v1250_v20  ;;  %v1257_v3 = vld [vmem:[#allocation10 + $0x338] sm:$0xff]  ;;  %v1270_v16 = vld [vmem:[#allocation10 + $0x3a0] sm:$0xff]  ;;  %v1267_v20 = vld [vmem:[#allocation10 + $0x388] sm:$0xff] }
 0x142   :  { %1451 = vmatpush.msra.mxu2 %v1234_v4  ;;  %1410 = vmatpush.msra.mxu0 %v1284_v22 }
 0x143   :  { %1399 = vmatpush.msra.mxu3 %v1209_v8  ;;  %v897_v24 = vadd.f32 %v896_v14, %v877_v17  ;;  %1426 = vmatpush.msra.mxu1 %v1201_v25  ;;  %v1165_v14 = vld [vmem:[#allocation10 + $0x58] sm:$0xff]  ;;  %v1162_v17 = vld [vmem:[#allocation10 + $0x40] sm:$0xff]  ;;  %v1156_v25 = vld [vmem:[#allocation10 + $0x10] sm:$0xff] }
 0x144   :  { %1452 = vmatpush.msra.mxu2 %v1231_v10  ;;  %1411 = vmatpush.msra.mxu0 %v1281_v27  ;;  %v1251_v10 = vld [vmem:[#allocation10 + $0x308] sm:$0xff]  ;;  %v1261_v27 = vld [vmem:[#allocation10 + $0x358] sm:$0xff] }
 0x145   :  { %1400 = vmatpush.msra.mxu3 %v1206_v12  ;;  %v2196_v28 = vpop.eup %2195  ;;  %v1140_v29 = vsub.f32 0.0, %v897_v24  ;;  %1427 = vmatpush.msra.mxu1 %v1198_v30  ;;  %v1273_v12 = vld [vmem:[#allocation10 + $0x3b8] sm:$0xff]  ;;  %v1264_v24 = vld [vmem:[#allocation10 + $0x370] sm:$0xff] }
 0x146   :  { %1453 = vmatpush.msra.mxu2 %v1228_v15  ;;  %v1148_v31 = vadd.f32 1.0, %v2196_v28  ;;  %1412 = vmatpush.msra.mxu0 %v1278_v34  ;;  %v1258_v28 = vld [vmem:[#allocation10 + $0x340] sm:$0xff]  ;;  %v1252_v30 = vld [vmem:[#allocation10 + $0x310] sm:$0xff] }
 0x147   :  { %1401 = vmatpush.msra.mxu3 %v1203_v19  ;;  %v1144_v35 = vmul.f32 1.442695, %v1140_v29  ;;  %1428 = vmatpush.msra.mxu1 %v1195_v36  ;;  %v1255_v29 = vld [vmem:[#allocation10 + $0x328] sm:$0xff] }
 0x148   :  { %1454 = vmatpush.msra.mxu2 %v1225_v21  ;;  %2197 = vrcp.f32 %v1148_v31  ;;  %1413 = vmatpush.msra.mxu0 %v1275_v39  ;;  %v1159_v21 = vld [vmem:[#allocation10 + $0x28] sm:$0xff] }
 0x149   :  { %2199 = vpow2.f32 %v1144_v35  ;;  %1429 = vmatpush.msra.mxu1 %v1192_v40  ;;  %v712_v35 = vperm.slane %v3149_v18, 3 }
 0x14a   :  { %1455 = vmatpush.msra.mxu2 %v1222_v26  ;;  %1414 = vmatpush.msra.mxu0 %v1272_v42 }
 0x14b   :  { %1430 = vmatpush.msra.mxu1 %v1189_v44 }
 0x14c   :  { %1456 = vmatpush.msra.mxu2 %v1219_v32  ;;  %1415 = vmatpush.msra.mxu0 %v1269_v48 }
 0x14d   :  { %1431 = vmatpush.msra.mxu1 %v1186_v49 }
 0x14e   :  { %1457 = vmatpush.msra.mxu2 %v1216_v37  ;;  %v3153_v47 = vpop.eup %2197  ;;  %1416 = vmatpush.msra.mxu0 %v1266_v54 }
 0x14f   :  { %v2200_v50 = vpop.eup %2199  ;;  %1322 = vmatmul.f32.vlgmr.msrb.gmra.mxu3 %v3153_v47  ;;  %1382 = vmatmul.f32.vlgmr.msrb.gmra.mxu2 %v3153_v47 }
 0x150   :  { %1458 = vmatpush.msra.mxu2 %v1213_v41  ;;  %v1149_v53 = vadd.f32 1.0, %v2200_v50  ;;  %1466 = vmatpush.msrb.mxu3 %v1297_v45 }
 0x151   :  { %1432 = vmatpush.msra.mxu1 %v1183_v55  ;;  %1417 = vmatpush.msra.mxu0 %v1263_v58  ;;  %v1503_v58 = vld [vmem:[#allocation13 + $0x70] sm:$0xff] }
 0x152   :  { %1459 = vmatpush.msra.mxu2 %v1210_v46  ;;  %2201 = vrcp.f32 %v1149_v53  ;;  %1467 = vmatpush.msrb.mxu3 %v1294_v51  ;;  %v713_v46 = vperm.slane %v3149_v18, 4  ;;  %v1501_v18 = vld [vmem:[#allocation13 + $0x60] sm:$0xff] }
 0x153   :  { %1433 = vmatpush.msra.mxu1 %v1180_v59  ;;  %1418 = vmatpush.msra.mxu0 %v1260_v60  ;;  %v976_v43 = vpop.f32.mrf.mxu1  ;;  %v1502_v59 = vld [vmem:[#allocation13 + $0x68] sm:$0xff]  ;;  %v1517_v60 = vld [vmem:[#allocation13 + $0xe0] sm:$0xff] }
 0x154   :  { %1460 = vmatpush.msra.mxu2 %v1207_v52  ;;  %1468 = vmatpush.msrb.mxu3 %v1291_v56  ;;  %v1504_v56 = vld [vmem:[#allocation13 + $0x78] sm:$0xff] }
 0x155   :  { %1434 = vmatpush.msra.mxu1 %v1177_v61  ;;  %1419 = vmatpush.msra.mxu0 %v1257_v3  ;;  %v1500_v61 = vld [vmem:[#allocation13 + $0x58] sm:$0xff]  ;;  %v1534_v3 = vld [vmem:[#allocation13 + $0x168] sm:$0xff] }
 0x156   :  { %1461 = vmatpush.msra.mxu2 %v1204_v57  ;;  %1469 = vmatpush.msrb.mxu3 %v1288_v23  ;;  %v1520_v57 = vld [vmem:[#allocation13 + $0xf8] sm:$0xff]  ;;  %v1518_v23 = vld [vmem:[#allocation13 + $0xe8] sm:$0xff] }
 0x157   :  { %1435 = vmatpush.msra.mxu1 %v1174_v33  ;;  %1420 = vmatpush.msra.mxu0 %v1254_v6  ;;  %v1498_v33 = vld [vmem:[#allocation13 + $0x48] sm:$0xff]  ;;  %v1497_v6 = vld [vmem:[#allocation13 + $0x40] sm:$0xff] }
 0x158   :  { %v2202_v1 = vpop.eup %2201  ;;  %v916_v2 = vpop.f32.mrf.mxu2  ;;  %1470 = vmatpush.msrb.mxu3 %v1285_v63  ;;  %v1536_v63 = vld [vmem:[#allocation13 + $0x178] sm:$0xff] }
 0x159   :  { %v917_v4 = vadd.f32 %v916_v2, %v711_v62  ;;  %1402 = vmatmul.f32.vlgmr.msra.gmra.mxu3 %v2202_v1  ;;  %1342 = vmatmul.f32.vlgmr.msrb.gmra.mxu0 %v2202_v1  ;;  %v1516_v62 = vld [vmem:[#allocation13 + $0xd8] sm:$0xff]  ;;  %v1535_v2 = vld [vmem:[#allocation13 + $0x170] sm:$0xff] }
 0x15a   :  { %1471 = vmatpush.msrb.mxu3 %v1282_v0  ;;  %1462 = vmatmul.f32.vlgmr.msra.gmra.mxu2 %v2202_v1  ;;  %v1499_v0 = vld [vmem:[#allocation13 + $0x50] sm:$0xff] }
 0x15b   :  { %v936_v8 = vpop.f32.mrf.mxu3  ;;  %1436 = vmatpush.msra.mxu1 %v1171_v7  ;;  %1421 = vmatpush.msra.mxu0 %v1251_v10  ;;  %v1515_v1 = vld [vmem:[#allocation13 + $0xd0] sm:$0xff]  ;;  %v1513_v7 = vld [vmem:[#allocation13 + $0xc0] sm:$0xff] }
 0x15c   :  { %v937_v9 = vadd.f32 %v936_v8, %v917_v4  ;;  %1472 = vmatpush.msrb.mxu3 %v1279_v5  ;;  %1577 = vmatpush.msrb.mxu2 %v1536_v63  ;;  %v1514_v4 = vld [vmem:[#allocation13 + $0xc8] sm:$0xff]  ;;  %v1533_v5 = vld [vmem:[#allocation13 + $0x160] sm:$0xff]  ;;  %v1532_v8 = vld [vmem:[#allocation13 + $0x158] sm:$0xff] }
 0x15d   :  { %1437 = vmatpush.msra.mxu1 %v1168_v11  ;;  %1537 = vmatpush.msrb.mxu0 %v1504_v56  ;;  %v1531_v10 = vld [vmem:[#allocation13 + $0x150] sm:$0xff] }
 0x15e   :  { %v956_v13 = vpop.f32.mrf.mxu0  ;;  %1473 = vmatpush.msrb.mxu3 %v1276_v38  ;;  %1578 = vmatpush.msrb.mxu2 %v1535_v2  ;;  %v1496_v38 = vld [vmem:[#allocation13 + $0x38] sm:$0xff]  ;;  %v1495_v11 = vld [vmem:[#allocation13 + $0x30] sm:$0xff] }
 0x15f   :  { %v957_v15 = vadd.f32 %v956_v13, %v937_v9  ;;  %1438 = vmatpush.msra.mxu1 %v1165_v14  ;;  %1538 = vmatpush.msrb.mxu0 %v1503_v58  ;;  %v1512_v9 = vld [vmem:[#allocation13 + $0xb8] sm:$0xff]  ;;  %v1530_v13 = vld [vmem:[#allocation13 + $0x148] sm:$0xff] }
 0x160   :  { %1474 = vmatpush.msrb.mxu3 %v1273_v12  ;;  %1579 = vmatpush.msrb.mxu2 %v1534_v3  ;;  %v1511_v12 = vld [vmem:[#allocation13 + $0xb0] sm:$0xff]  ;;  %v1510_v14 = vld [vmem:[#allocation13 + $0xa8] sm:$0xff]  ;;  %v2183_v3 = vld [vmem:[#allocation14] ss:$0 sm:$0xff] }
 0x161   :  { %v977_v19 = vadd.f32 %v976_v43, %v957_v15  ;;  %1439 = vmatpush.msra.mxu1 %v1162_v17  ;;  %1539 = vmatpush.msrb.mxu0 %v1502_v59  ;;  %v1494_v43 = vld [vmem:[#allocation13 + $0x28] sm:$0xff]  ;;  %v1493_v15 = vld [vmem:[#allocation13 + $0x20] sm:$0xff]  ;;  %v1492_v17 = vld [vmem:[#allocation13 + $0x18] sm:$0xff] }
 0x162   :  { %1475 = vmatpush.msrb.mxu3 %v1270_v16  ;;  %1580 = vmatpush.msrb.mxu2 %v1533_v5  ;;  %v1509_v16 = vld [vmem:[#allocation13 + $0xa0] sm:$0xff] }
 0x163   :  { %v1141_v22 = vsub.f32 0.0, %v977_v19  ;;  %1440 = vmatpush.msra.mxu1 %v1159_v21  ;;  %1540 = vmatpush.msrb.mxu0 %v1501_v18  ;;  %v1508_v19 = vld [vmem:[#allocation13 + $0x98] sm:$0xff]  ;;  %v1507_v21 = vld [vmem:[#allocation13 + $0x90] sm:$0xff] }
 0x164   :  { %1476 = vmatpush.msrb.mxu3 %v1267_v20  ;;  %1581 = vmatpush.msrb.mxu2 %v1532_v8  ;;  %v1491_v20 = vld [vmem:[#allocation13 + $0x10] sm:$0xff] }
 0x165   :  { %v1146_v26 = vmul.f32 1.442695, %v1141_v22  ;;  %1441 = vmatpush.msra.mxu1 %v1156_v25  ;;  %1541 = vmatpush.msrb.mxu0 %v1500_v61  ;;  %v1529_v22 = vld [vmem:[#allocation13 + $0x140] sm:$0xff]  ;;  %v1506_v25 = vld [vmem:[#allocation13 + $0x88] sm:$0xff] }
 0x166   :  { %1477 = vmatpush.msrb.mxu3 %v1264_v24  ;;  %1582 = vmatpush.msrb.mxu2 %v1531_v10  ;;  %v1490_v24 = vld [vmem:[#allocation13 + $0x8] sm:$0xff] }
 0x167   :  { %2203 = vpow2.f32 %v1146_v26  ;;  %1542 = vmatpush.msrb.mxu0 %v1499_v0  ;;  %v1528_v26 = vld [vmem:[#allocation13 + $0x138] sm:$0xff] }
 0x168   :  { %1478 = vmatpush.msrb.mxu3 %v1261_v27  ;;  %1583 = vmatpush.msrb.mxu2 %v1530_v13  ;;  %v1489_v27 = vld [vmem:[#allocation13] sm:$0xff]  ;;  %v3165_v13 = vld [vmem:[#allocation5] sm:$0xff] }
 0x169   :  { %1543 = vmatpush.msrb.mxu0 %v1498_v33 }
 0x16a   :  { %1479 = vmatpush.msrb.mxu3 %v1258_v28  ;;  %1584 = vmatpush.msrb.mxu2 %v1529_v22  ;;  %v1505_v28 = vld [vmem:[#allocation13 + $0x80] sm:$0xff] }
 0x16b   :  { %1544 = vmatpush.msrb.mxu0 %v1497_v6  ;;  %v2184_v6 = vld [vmem:[#allocation16] ss:$0 sm:$0xff] }
 0x16c   :  { %1480 = vmatpush.msrb.mxu3 %v1255_v29  ;;  %v1527_v29 = vld [vmem:[#allocation13 + $0x130] sm:$0xff]  ;;  %1585 = vmatpush.msrb.mxu2 %v1528_v26 }
 0x16d   :  { %v2204_v31 = vpop.eup %2203  ;;  %1545 = vmatpush.msrb.mxu0 %v1496_v38 }
 0x16e   :  { %v1150_v32 = vadd.f32 1.0, %v2204_v31  ;;  %1481 = vmatpush.msrb.mxu3 %v1252_v30  ;;  %1586 = vmatpush.msrb.mxu2 %v1527_v29  ;;  %v1526_v30 = vld [vmem:[#allocation13 + $0x128] sm:$0xff]  ;;  %v1525_v31 = vld [vmem:[#allocation13 + $0x120] sm:$0xff] }
 0x16f   :  { %1546 = vmatpush.msrb.mxu0 %v1495_v11  ;;  %v1973_v29 = vld [vmem:[#allocation31 + $0x8] sm:$0xff] }
 0x170   :  { %2205 = vrcp.f32 %v1150_v32  ;;  %1587 = vmatpush.msrb.mxu2 %v1526_v30  ;;  %v1524_v32 = vld [vmem:[#allocation13 + $0x118] sm:$0xff] }
 0x171   :  { %1547 = vmatpush.msrb.mxu0 %v1494_v43  ;;  %v1972_v30 = vld [vmem:[#allocation31] sm:$0xff] }
 0x172   :  { %1588 = vmatpush.msrb.mxu2 %v1525_v31 }
 0x173   :  { %1548 = vmatpush.msrb.mxu0 %v1493_v15 }
 0x174   :  { %1589 = vmatpush.msrb.mxu2 %v1524_v32 }
 0x175   :  { %1549 = vmatpush.msrb.mxu0 %v1492_v17  ;;  %v1979_v17 = vld [vmem:[#allocation31 + $0x38] sm:$0xff] }
 0x176   :  { %v2206_v34 = vpop.eup %2205 }
 0x177   :  { %1362 = vmatmul.f32.vlgmr.msrb.gmra.mxu1 %v2206_v34  ;;  %1422 = vmatmul.f32.vlgmr.msra.gmra.mxu0 %v2206_v34 }
 0x178   :  { %1482 = vmatmul.f32.vlgmr.msrb.gmra.mxu3 %v2206_v34  ;;  %1557 = vmatpush.msrb.mxu1 %v1520_v57  ;;  %v1523_v34 = vld [vmem:[#allocation13 + $0x110] sm:$0xff] }
 0x179   :  { %v996_v36 = vpop.f32.mrf.mxu1  ;;  %1550 = vmatpush.msrb.mxu0 %v1491_v20  ;;  %1590 = vmatpush.msrb.mxu2 %v1523_v34  ;;  %v1977_v20 = vld [vmem:[#allocation31 + $0x28] sm:$0xff] }
 0x17a   :  { %v997_v37 = vadd.f32 %v996_v36, %v712_v35  ;;  %v1522_v35 = vld [vmem:[#allocation13 + $0x108] sm:$0xff]  ;;  %v1521_v36 = vld [vmem:[#allocation13 + $0x100] sm:$0xff] }
 0x17b   :  { %v1036_v40 = vpop.f32.mrf.mxu3  ;;  %1551 = vmatpush.msrb.mxu0 %v1490_v24  ;;  %1591 = vmatpush.msrb.mxu2 %v1522_v35  ;;  %v1975_v24 = vld [vmem:[#allocation31 + $0x18] sm:$0xff] }
 0x17c   :  { %v1016_v39 = vpop.f32.mrf.mxu2 }
 0x17d   :  { %v1017_v41 = vadd.f32 %v1016_v39, %v997_v37  ;;  %1552 = vmatpush.msrb.mxu0 %v1489_v27  ;;  %1592 = vmatpush.msrb.mxu2 %v1521_v36  ;;  %v1298_v39 = vld [vmem:[#allocation11] sm:$0x7] }
 0x17f   :  { %1442 = vmatmul.f32.vlgmr.msra.gmra.mxu1 %v3153_v47  ;;  %v1037_v42 = vadd.f32 %v1036_v40, %v1017_v41  ;;  %v1519_v47 = vld [vmem:[#allocation13 + $0xf0] sm:$0xff]  ;;  %v1300_v40 = vperm.slane %v1298_v39, 0  ;;  %1991 = vmatpush.msra.mxu0 %v1979_v17 }
 0x180   :  { %v1056_v44 = vpop.f32.mrf.mxu0  ;;  %1558 = vmatpush.msrb.mxu1 %v1519_v47  ;;  %v1302_v47 = vperm.slane %v1298_v39, 2 }
 0x181   :  { %v3160_v45 = vadd.f32 %v1056_v44, %v1037_v42  ;;  %v1301_v42 = vperm.slane %v1298_v39, 1 }
 0x182   :  { %1559 = vmatpush.msrb.mxu1 %v1518_v23 }
 0x183   :  { %2207 = vtanh.f32 %v3160_v45  ;;  %v1946_v22 = vsub.f32 0.0, %v3160_v45 }
 0x184   :  { %1560 = vmatpush.msrb.mxu1 %v1517_v60 }
 0x185   :  { %v1947_v26 = vmul.f32 1.442695, %v1946_v22 }
 0x186   :  { %1561 = vmatpush.msrb.mxu1 %v1516_v62 }
 0x187   :  { %2209 = vpow2.f32 %v1947_v26  ;;  %v1830_v26 = vld [vmem:[%s3290_s20 + $0x70] sm:$0xff] }
 0x188   :  { %1562 = vmatpush.msrb.mxu1 %v1515_v1 }
 0x18a   :  { %1563 = vmatpush.msrb.mxu1 %v1514_v4 }
 0x18c   :  { %1564 = vmatpush.msrb.mxu1 %v1513_v7 }
 0x18e   :  { %1565 = vmatpush.msrb.mxu1 %v1512_v9 }
 0x190   :  { %1566 = vmatpush.msrb.mxu1 %v1511_v12 }
 0x192   :  { %1567 = vmatpush.msrb.mxu1 %v1510_v14 }
 0x194   :  { %1568 = vmatpush.msrb.mxu1 %v1509_v16  ;;  %v2208_v16 = vpop.eup %2207 }
 0x195   :  { %v2210_v35 = vpop.eup %2209 }
 0x196   :  { %1569 = vmatpush.msrb.mxu1 %v1508_v19  ;;  %v1978_v19 = vld [vmem:[#allocation31 + $0x30] sm:$0xff] }
 0x197   :  { %1992 = vmatpush.msra.mxu0 %v1978_v19 }
 0x198   :  { %1570 = vmatpush.msrb.mxu1 %v1507_v21  ;;  %v1976_v21 = vld [vmem:[#allocation31 + $0x20] sm:$0xff] }
 0x199   :  { %v1136_v53 = vpop.f32.mrf.mxu3  ;;  %1993 = vmatpush.msra.mxu0 %v1977_v20 }
 0x19a   :  { %1571 = vmatpush.msrb.mxu1 %v1506_v25  ;;  %v1974_v25 = vld [vmem:[#allocation31 + $0x10] sm:$0xff] }
 0x19b   :  { %v1076_v48 = vpop.f32.mrf.mxu0  ;;  %1994 = vmatpush.msra.mxu0 %v1976_v21 }
 0x19c   :  { %v1077_v49 = vadd.f32 %v1076_v48, %v713_v46  ;;  %1572 = vmatpush.msrb.mxu1 %v1505_v28 }
 0x19d   :  { %1995 = vmatpush.msra.mxu0 %v1975_v24 }
 0x19e   :  { %v1096_v50 = vpop.f32.mrf.mxu1  ;;  %v1116_v51 = vpop.f32.mrf.mxu2 }
 0x19f   :  { %v1097_v52 = vadd.f32 %v1096_v50, %v1077_v49  ;;  %1996 = vmatpush.msra.mxu0 %v1974_v25  ;;  %v1831_v25 = vld [vmem:[%s3290_s20 + $0x78] sm:$0xff] }
 0x1a0   :  { %1832 = vmatpush.msra.mxu1 %v1831_v25  ;;  %v2034_v25 = vld [vmem:[#allocation34 + $0x10] sm:$0xff] }
 0x1a1   :  { %v1117_v54 = vadd.f32 %v1116_v51, %v1097_v52  ;;  %1997 = vmatpush.msra.mxu0 %v1973_v29  ;;  %v1827_v29 = vld [vmem:[%s3290_s20 + $0x58] sm:$0xff] }
 0x1a2   :  { %1833 = vmatpush.msra.mxu1 %v1830_v26  ;;  %v2033_v26 = vld [vmem:[#allocation34 + $0x8] sm:$0xff] }
 0x1a3   :  { %v3163_v55 = vadd.f32 %v1136_v53, %v1117_v54  ;;  %1998 = vmatpush.msra.mxu0 %v1972_v30  ;;  %v1826_v30 = vld [vmem:[%s3290_s20 + $0x50] sm:$0xff] }
 0x1a5   :  { %v1952_v32 = vsub.f32 0.0, %v3163_v55 }
 0x1a7   :  { %v1953_v34 = vmul.f32 1.442695, %v1952_v32  ;;  %v1824_v32 = vld [vmem:[%s3290_s20 + $0x40] sm:$0xff] }
 0x1d2   :  { %v1323_v37 = vpop.f32.mrf.mxu3  ;;  %v1383_v44 = vpop.f32.mrf.mxu2 }
 0x1d3   :  { %v1324_v46 = vadd.f32 %v1323_v37, %v1300_v40  ;;  %v1384_v49 = vadd.f32 %v1383_v44, %v1301_v42  ;;  %v1949_v37 = vadd.f32 1.0, %v2210_v35  ;;  %v1822_v35 = vld [vmem:[%s3290_s20 + $0x30] sm:$0xff] }
 0x1d6   :  { %v1343_v41 = vpop.f32.mrf.mxu0 }
 0x1d7   :  { %v1344_v50 = vadd.f32 %v1343_v41, %v1324_v46 }
 0x1dc   :  { %v1403_v48 = vpop.f32.mrf.mxu3 }
 0x1dd   :  { %v1404_v51 = vadd.f32 %v1403_v48, %v1384_v49  ;;  %v1463_v18 = vpop.f32.mrf.mxu2 }
 0x1f4   :  { %v1363_v52 = vpop.f32.mrf.mxu1  ;;  %v1423_v53 = vpop.f32.mrf.mxu0 }
 0x1f5   :  { %v1364_v54 = vadd.f32 %v1363_v52, %v1344_v50  ;;  %v1424_v56 = vadd.f32 %v1423_v53, %v1404_v51  ;;  %v1704_v50 = vld [vmem:[#allocation19 + $0x78] sm:$0xff]  ;;  %v1703_v51 = vld [vmem:[#allocation19 + $0x70] sm:$0xff]  ;;  %v1702_v52 = vld [vmem:[#allocation19 + $0x68] sm:$0xff] }
 0x1f6   :  { %v1701_v53 = vld [vmem:[#allocation19 + $0x60] sm:$0xff] }
 0x1f7   :  { %v1486_v57 = vmax.f32 %v1364_v54, 0.0  ;;  %v1487_v58 = vmax.f32 %v1424_v56, 0.0 }
 0x1f9   :  { %1553 = vmatmul.f32.vlgmr.msrb.gmra.mxu0 %v1486_v57  ;;  %1573 = vmatmul.f32.vlgmr.msrb.gmra.mxu1 %v1487_v58  ;;  %v1700_v57 = vld [vmem:[#allocation19 + $0x58] sm:$0xff]  ;;  %v1699_v58 = vld [vmem:[#allocation19 + $0x50] sm:$0xff] }
 0x1fb   :  { %v1483_v61 = vpop.f32.mrf.mxu3 }
 0x1fc   :  { %v1443_v59 = vpop.f32.mrf.mxu1 }
 0x1fd   :  { %v1444_v23 = vadd.f32 %v1443_v59, %v1302_v47  ;;  %v1698_v47 = vld [vmem:[#allocation19 + $0x48] sm:$0xff]  ;;  %v1697_v59 = vld [vmem:[#allocation19 + $0x40] sm:$0xff] }
 0x1ff   :  { %v1464_v60 = vadd.f32 %v1463_v18, %v1444_v23  ;;  %v1696_v23 = vld [vmem:[#allocation19 + $0x38] sm:$0xff]  ;;  %v1695_v18 = vld [vmem:[#allocation19 + $0x30] sm:$0xff] }
 0x201   :  { %v1484_v62 = vadd.f32 %v1483_v61, %v1464_v60  ;;  %v1694_v60 = vld [vmem:[#allocation19 + $0x28] sm:$0xff]  ;;  %v1693_v61 = vld [vmem:[#allocation19 + $0x20] sm:$0xff] }
 0x203   :  { %v1488_v63 = vmax.f32 %v1484_v62, 0.0  ;;  %v1692_v62 = vld [vmem:[#allocation19 + $0x18] sm:$0xff] }
 0x205   :  { %1593 = vmatmul.f32.vlgmr.msrb.gmra.mxu2 %v1488_v63  ;;  %v1691_v63 = vld [vmem:[#allocation19 + $0x10] sm:$0xff] }
 0x276   :  { %v1554_v0 = vpop.f32.mrf.mxu0  ;;  %v1574_v1 = vpop.f32.mrf.mxu1 }
 0x277   :  { %v1575_v2 = vadd.f32 %v1574_v1, %v1554_v0  ;;  %v1690_v0 = vld [vmem:[#allocation19 + $0x8] sm:$0xff]  ;;  %v1689_v1 = vld [vmem:[#allocation19] sm:$0xff] }
 0x288   :  { %v1594_v33 = vpop.f32.mrf.mxu2 }
 0x289   :  { %v1595_v4 = vadd.f32 %v1594_v33, %v1575_v2  ;;  %v2185_v2 = vld [vmem:[#allocation17] ss:$0 sm:$0xff] }
 0x28b   :  { %1683 = vmatpush.msra.mxu3 %v1595_v4  ;;  %v1609_v5 = vmul.f32 %v2183_v3, %v1595_v4  ;;  %v1603_v7 = vmul.f32 %v2184_v6, %v1595_v4  ;;  %v2187_v6 = vld [vmem:[#allocation22] ss:$0 sm:$0xff] }
 0x28d   :  { %1610 = vadd.xlane.f32.xlu0 %v1609_v5  ;;  %1705 = vmatpush.msrb.mxu3 %v1704_v50  ;;  %v2186_v5 = vld [vmem:[#allocation20] ss:$0 sm:$0xff] }
 0x28f   :  { %1706 = vmatpush.msrb.mxu3 %v1703_v51  ;;  %v2190_v51 = vld [vmem:[#allocation25] ss:$0 sm:$0xff] }
 0x291   :  { %1707 = vmatpush.msrb.mxu3 %v1702_v52 }
 0x293   :  { %1708 = vmatpush.msrb.mxu3 %v1701_v53 }
 0x295   :  { %1604 = vadd.xlane.f32.xlu0 %v1603_v7  ;;  %1709 = vmatpush.msrb.mxu3 %v1700_v57 }
 0x297   :  { %1710 = vmatpush.msrb.mxu3 %v1699_v58 }
 0x299   :  { %1711 = vmatpush.msrb.mxu3 %v1698_v47 }
 0x29b   :  { %1712 = vmatpush.msrb.mxu3 %v1697_v59 }
 0x29d   :  { %1713 = vmatpush.msrb.mxu3 %v1696_v23 }
 0x29f   :  { %1714 = vmatpush.msrb.mxu3 %v1695_v18 }
 0x2a1   :  { %1715 = vmatpush.msrb.mxu3 %v1694_v60 }
 0x2a3   :  { %1716 = vmatpush.msrb.mxu3 %v1693_v61 }
 0x2a5   :  { %1717 = vmatpush.msrb.mxu3 %v1692_v62 }
 0x2a7   :  { %1718 = vmatpush.msrb.mxu3 %v1691_v63 }
 0x2a9   :  { %1719 = vmatpush.msrb.mxu3 %v1690_v0 }
 0x2ab   :  { %1720 = vmatpush.msrb.mxu3 %v1689_v1 }
 0x300   :  { %v1611_v8 = vpop.xlane.xlu0 %1610 }
 0x301   :  { %1612 = vxpose.xlu1.b32.start.end [1/1] (short) (narrow) %v1611_v8, 8 }
 0x308   :  { %v1605_v10 = vpop.xlane.xlu0 %1604 }
 0x3a5   :  { %v1628_v38 = vpop.trf.xlu1 }
 0x3a6   :  { %v1644_v9 = vperm.slane %v1628_v38, 0 }
 0x3a8   :  { %v1645_v11 = vadd.f32 %v1644_v9, %v1605_v10 }
 0x3aa   :  { %v1647_v12 = vmul.f32 0.2, %v1645_v11  ;;  %vm1646_vm2 = vcmp.gt.f32.partialorder %v1645_v11, 0.0 }
 0x3ac   :  { %v1648_v43 = vsel %vm1646_vm2, %v1645_v11, %v1647_v12 }
 0x3ad   :  { %v1649_v14 = vadd.f32 %v1648_v43, %v3165_v13 }
 0x3af   :  { %v1651_v15 = vsel %vm1650_vm3, %v1649_v14, -inf }
 0x3b0   :  { %1652 = vmax.xlane.f32.xlu1 %v1651_v15 }
 0x3c9   :  { %1958 = vrot.lane.b32.xlu1 %v2208_v16, %s2889_s0 }
 0x423   :  { %v1653_v27 = vpop.xlane.xlu1 %1652 }
 0x424   :  { %v1654_v28 = vsub.f32 %v1649_v14, %v1653_v27  ;;  %v1829_v27 = vld [vmem:[%s3290_s20 + $0x68] sm:$0xff] }
 0x425   :  { %1834 = vmatpush.msra.mxu1 %v1829_v27  ;;  %v2032_v27 = vld [vmem:[#allocation34] sm:$0xff] }
 0x426   :  { %v1655_v31 = vmul.f32 1.442695, %v1654_v28  ;;  %v1828_v28 = vld [vmem:[%s3290_s20 + $0x60] sm:$0xff] }
 0x427   :  { %1835 = vmatpush.msra.mxu1 %v1828_v28  ;;  %v2075_v28 = vld [vmem:[#allocation37 + $0x38] sm:$0xff] }
 0x428   :  { %2211 = vpow2.f32 %v1655_v31  ;;  %v1825_v31 = vld [vmem:[%s3290_s20 + $0x48] sm:$0xff] }
 0x429   :  { %2213 = vpow2.f32 %v1953_v34  ;;  %1836 = vmatpush.msra.mxu1 %v1827_v29  ;;  %v1823_v34 = vld [vmem:[%s3290_s20 + $0x38] sm:$0xff] }
 0x42a   :  { %2215 = vrcp.f32 %v1949_v37  ;;  %v2074_v29 = vld [vmem:[#allocation37 + $0x30] sm:$0xff] }
 0x42b   :  { %1837 = vmatpush.msra.mxu1 %v1826_v30  ;;  %v2073_v30 = vld [vmem:[#allocation37 + $0x28] sm:$0xff] }
 0x42d   :  { %1838 = vmatpush.msra.mxu1 %v1825_v31  ;;  %v2072_v31 = vld [vmem:[#allocation37 + $0x20] sm:$0xff] }
 0x42e   :  { %v2212_v45 = vpop.eup %2211 }
 0x42f   :  { %v1657_v36 = vsel %vm1650_vm3, %v2212_v45, 0.0  ;;  %v2214_v39 = vpop.eup %2213  ;;  %1839 = vmatpush.msra.mxu1 %v1824_v32  ;;  %v2071_v32 = vld [vmem:[#allocation37 + $0x18] sm:$0xff] }
 0x430   :  { %1658 = vadd.xlane.f32.xlu2 %v1657_v36  ;;  %v1955_v40 = vadd.f32 1.0, %v2214_v39  ;;  %v2216_v41 = vpop.eup %2215  ;;  %v1820_v36 = vld [vmem:[%s3290_s20 + $0x20] sm:$0xff]  ;;  %v1819_v39 = vld [vmem:[%s3290_s20 + $0x18] sm:$0xff] }
 0x431   :  { %1840 = vmatpush.msra.mxu1 %v1823_v34  ;;  %v2192_v34 = vld [vmem:[#allocation32] ss:$0 sm:$0xff] }
 0x432   :  { %2217 = vrcp.f32 %v1955_v40 }
 0x433   :  { %1841 = vmatpush.msra.mxu1 %v1822_v35 }
 0x438   :  { %v2218_v46 = vpop.eup %2217 }
 0x43b   :  { %v1959_v42 = vpop.permute.xlu1 %1958 }
 0x43c   :  { %v1961_v44 = vmul.f32 %v2216_v41, %v1959_v42  ;;  %v1818_v42 = vld [vmem:[%s3290_s20 + $0x10] sm:$0xff] }
 0x43e   :  { %2219 = vtanh.f32 %v1961_v44  ;;  %v1817_v44 = vld [vmem:[%s3290_s20 + $0x8] sm:$0xff] }
 0x444   :  { %v2220_v48 = vpop.eup %2219 }
 0x445   :  { %v1963_v55 = vmul.f32 %v2220_v48, %v2218_v46  ;;  %v1816_v46 = vld [vmem:[%s3290_s20] sm:$0xff]  ;;  %v2188_v48 = vld [vmem:[#allocation23] ss:$0 sm:$0xff] }
 0x447   :  { %2146 = vmatmul.msk.f32.vlgmr.msra.gmra.mxu0 %vm1859_vm4, %v1963_v55 }
 0x4a3   :  { %v1659_v49 = vpop.xlane.xlu2 %1658 }
 0x4a4   :  { %2221 = vrcp.f32 %v1659_v49 }
 0x4aa   :  { %v2222_v54 = vpop.eup %2221 }
 0x4ab   :  { %v1661_v56 = vmul.f32 %v2222_v54, %v2212_v45  ;;  %v1821_v45 = vld [vmem:[%s3290_s20 + $0x28] sm:$0xff]  ;;  %v2189_v54 = vld [vmem:[#allocation26] ss:$0 sm:$0xff]  ;;  %s2890_s20 = smov [#allocation40]  }
 0x4ac   :  { %1842 = vmatpush.msra.mxu1 %v1821_v45  ;;  %s2109_s11 = sshll.u32 %s2890_s20, 4  ;;  %s2110_s11 = int_to_ptr.vmem [resolvable:$true] %s2109_s11 }
 0x4ad   :  { %2143 = vmatmul.msk.f32.vlgmr.msra.gmra.mxu3 %vm1650_vm3, %v1661_v56 }
 0x4ae   :  { %1843 = vmatpush.msra.mxu1 %v1820_v36 }
 0x4b0   :  { %1844 = vmatpush.msra.mxu1 %v1819_v39 }
 0x4b2   :  { %1845 = vmatpush.msra.mxu1 %v1818_v42  ;;  %v2068_v42 = vld [vmem:[#allocation37] sm:$0xff] }
 0x4b4   :  { %1846 = vmatpush.msra.mxu1 %v1817_v44  ;;  %v2193_v44 = vld [vmem:[#allocation35] ss:$0 sm:$0xff] }
 0x4b6   :  { %1847 = vmatpush.msra.mxu1 %v1816_v46 }
 0x4c4   :  { %v2000_v35 = vpop.f32.mrf.mxu0 }
 0x530   :  { %v1685_v3 = vpop.f32.mrf.mxu3 }
 0x531   :  { %v1686_v33 = vadd.f32 %v2185_v2, %v1685_v3 }
 0x533   :  { %v1688_v4 = vmax.f32 %v1686_v33, 0.0 }
 0x535   :  { %1721 = vmatmul.f32.vlgmr.msrb.gmra.mxu3 %v1688_v4 }
 0x5b8   :  { %v1722_v7 = vpop.f32.mrf.mxu3 }
 0x5b9   :  { %1810 = vmatpush.msra.mxu3 %v1722_v7  ;;  %v1737_v8 = vmul.f32 %v2186_v5, %v1722_v7  ;;  %v1731_v38 = vmul.f32 %v2187_v6, %v1722_v7  ;;  %v1971_v5 = vld [vmem:[#allocation29 + $0x38] sm:$0xff]  ;;  %v1970_v6 = vld [vmem:[#allocation29 + $0x30] sm:$0xff]  ;;  %v1969_v7 = vld [vmem:[#allocation29 + $0x28] sm:$0xff] }
 0x5bb   :  { %1738 = vadd.xlane.f32.xlu2 %v1737_v8  ;;  %1732 = vadd.xlane.f32.xlu0 %v1731_v38  ;;  %v1968_v8 = vld [vmem:[#allocation29 + $0x20] sm:$0xff]  ;;  %v1967_v38 = vld [vmem:[#allocation29 + $0x18] sm:$0xff] }
 0x62e   :  { %v1739_v9 = vpop.xlane.xlu2 %1738  ;;  %v1733_v12 = vpop.xlane.xlu0 %1732 }
 0x62f   :  { %1740 = vxpose.xlu2.b32.start.end [1/1] (short) (narrow) %v1739_v9, 8 }
 0x6c8   :  { %v1756_v10 = vpop.trf.xlu2 }
 0x6c9   :  { %v1772_v11 = vperm.slane %v1756_v10, 0 }
 0x6cb   :  { %v1773_v43 = vadd.f32 %v1772_v11, %v1733_v12  ;;  %v1966_v11 = vld [vmem:[#allocation29 + $0x10] sm:$0xff]  ;;  %v1965_v12 = vld [vmem:[#allocation29 + $0x8] sm:$0xff] }
 0x6cd   :  { %v1775_v14 = vmul.f32 0.2, %v1773_v43  ;;  %vm1774_vm5 = vcmp.gt.f32.partialorder %v1773_v43, 0.0 }
 0x6cf   :  { %v1776_v15 = vsel %vm1774_vm5, %v1773_v43, %v1775_v14  ;;  %v1964_v43 = vld [vmem:[#allocation29] sm:$0xff] }
 0x6d0   :  { %v1777_v16 = vadd.f32 %v1776_v15, %v3165_v13  ;;  %v2039_v14 = vld [vmem:[#allocation34 + $0x38] sm:$0xff]  ;;  %v2038_v15 = vld [vmem:[#allocation34 + $0x30] sm:$0xff] }
 0x6d1   :  { %2055 = vmatpush.msrb.mxu0 %v2039_v14 }
 0x6d2   :  { %v1778_v17 = vsel %vm1650_vm3, %v1777_v16, -inf }
 0x6d3   :  { %1779 = vmax.xlane.f32.xlu0 %v1778_v17  ;;  %2056 = vmatpush.msrb.mxu0 %v2038_v15  ;;  %v2036_v17 = vld [vmem:[#allocation34 + $0x20] sm:$0xff] }
 0x746   :  { %v1780_v19 = vpop.xlane.xlu0 %1779 }
 0x747   :  { %v1781_v20 = vsub.f32 %v1777_v16, %v1780_v19  ;;  %v2037_v16 = vld [vmem:[#allocation34 + $0x28] sm:$0xff]  ;;  %v2191_v19 = vld [vmem:[#allocation28] ss:$0 sm:$0xff] }
 0x748   :  { %2057 = vmatpush.msrb.mxu0 %v2037_v16 }
 0x749   :  { %v1782_v21 = vmul.f32 1.442695, %v1781_v20 }
 0x74a   :  { %2058 = vmatpush.msrb.mxu0 %v2036_v17 }
 0x74b   :  { %2223 = vpow2.f32 %v1782_v21 }
 0x751   :  { %v2224_v22 = vpop.eup %2223 }
 0x752   :  { %v1784_v24 = vsel %vm1650_vm3, %v2224_v22, 0.0 }
 0x753   :  { %1785 = vadd.xlane.f32.xlu0 %v1784_v24  ;;  %v2035_v24 = vld [vmem:[#allocation34 + $0x18] sm:$0xff] }
 0x754   :  { %2059 = vmatpush.msrb.mxu0 %v2035_v24 }
 0x756   :  { %2060 = vmatpush.msrb.mxu0 %v2034_v25 }
 0x758   :  { %2061 = vmatpush.msrb.mxu0 %v2033_v26 }
 0x75a   :  { %2062 = vmatpush.msrb.mxu0 %v2032_v27 }
 0x7c6   :  { %v1786_v37 = vpop.xlane.xlu0 %1785 }
 0x7c7   :  { %2225 = vrcp.f32 %v1786_v37 }
 0x7cd   :  { %v2226_v40 = vpop.eup %2225 }
 0x7ce   :  { %v1788_v41 = vmul.f32 %v2226_v40, %v2224_v22  ;;  %v2070_v40 = vld [vmem:[#allocation37 + $0x10] sm:$0xff] }
 0x7d0   :  { %2144 = vmatmul.msk.f32.vlgmr.msra.gmra.mxu3 %vm1650_vm3, %v1788_v41  ;;  %v2069_v41 = vld [vmem:[#allocation37 + $0x8] sm:$0xff] }
 0x853   :  { %v1812_v55 = vpop.f32.mrf.mxu3 }
 0x854   :  { %v1813_v49 = vadd.f32 %v2188_v48, %v1812_v55 }
 0x856   :  { %v1815_v50 = vmax.f32 %v1813_v49, 0.0  ;;  %v2194_v49 = vld [vmem:[#allocation38] ss:$0 sm:$0xff] }
 0x858   :  { %1848 = vmatmul.f32.vlgmr.msra.gmra.mxu1 %v1815_v50 }
 0x8d5   :  { %v1849_v52 = vpop.f32.mrf.mxu1 }
 0x8d6   :  { %v1866_v53 = vmul.f32 %v2190_v51, %v1849_v52  ;;  %1940 = vmatpush.msra.mxu2 %v1849_v52  ;;  %v1858_v57 = vmul.f32 %v2189_v54, %v1849_v52 }
 0x8d8   :  { %v1867_v56 = vsel %vm1859_vm4, %v1866_v53, 0.0  ;;  %v1860_v58 = vsel %vm1859_vm4, %v1858_v57, 0.0  ;;  %2014 = vmatpush.msrb.mxu2 %v1971_v5 }
 0x8d9   :  { %1868 = vadd.xlane.f32.xlu0 %v1867_v56 }
 0x8da   :  { %2015 = vmatpush.msrb.mxu2 %v1970_v6 }
 0x8dc   :  { %2016 = vmatpush.msrb.mxu2 %v1969_v7 }
 0x8de   :  { %2017 = vmatpush.msrb.mxu2 %v1968_v8 }
 0x8e0   :  { %2018 = vmatpush.msrb.mxu2 %v1967_v38 }
 0x8e1   :  { %1861 = vadd.xlane.f32.xlu0 %v1860_v58 }
 0x8e2   :  { %2019 = vmatpush.msrb.mxu2 %v1966_v11 }
 0x8e4   :  { %2020 = vmatpush.msrb.mxu2 %v1965_v12 }
 0x8e6   :  { %2021 = vmatpush.msrb.mxu2 %v1964_v43 }
 0x94c   :  { %v1869_v47 = vpop.xlane.xlu0 %1868 }
 0x94d   :  { %1870 = vxpose.xlu0.b32.start.end [1/1] (short) (narrow) %v1869_v47, 8 }
 0x954   :  { %v1862_v59 = vpop.xlane.xlu0 %1861 }
 0x9f1   :  { %v1886_v23 = vpop.trf.xlu0 }
 0x9f2   :  { %v1902_v18 = vperm.slane %v1886_v23, 0 }
 0x9f4   :  { %v1903_v60 = vadd.f32 %v1902_v18, %v1862_v59 }
 0x9f6   :  { %v1905_v61 = vmul.f32 0.2, %v1903_v60  ;;  %vm1904_vm6 = vcmp.gt.f32.partialorder %v1903_v60, 0.0 }
 0x9f8   :  { %v1906_v62 = vsel %vm1904_vm6, %v1903_v60, %v1905_v61 }
 0x9f9   :  { %v1907_v63 = vadd.f32 %v1906_v62, %v3165_v13 }
 0x9fb   :  { %v1908_v0 = vsel %vm1650_vm3, %v1907_v63, -inf }
 0x9fc   :  { %1909 = vmax.xlane.f32.xlu2 %v1908_v0 }
 0xa6f   :  { %v1910_v1 = vpop.xlane.xlu2 %1909 }
 0xa70   :  { %v1911_v2 = vsub.f32 %v1907_v63, %v1910_v1 }
 0xa72   :  { %v1912_v3 = vmul.f32 1.442695, %v1911_v2 }
 0xa74   :  { %2227 = vpow2.f32 %v1912_v3 }
 0xa7a   :  { %v2228_v33 = vpop.eup %2227 }
 0xa7b   :  { %v1914_v4 = vsel %vm1650_vm3, %v2228_v33, 0.0 }
 0xa7c   :  { %1915 = vadd.xlane.f32.xlu0 %v1914_v4 }
 0xaef   :  { %v1916_v13 = vpop.xlane.xlu0 %1915 }
 0xaf0   :  { %2229 = vrcp.f32 %v1916_v13 }
 0xaf6   :  { %v2230_v9 = vpop.eup %2229 }
 0xaf7   :  { %v1918_v10 = vmul.f32 %v2230_v9, %v2228_v33 }
 0xaf9   :  { %2145 = vmatmul.msk.f32.vlgmr.msra.gmra.mxu2 %vm1650_vm3, %v1918_v10 }
 0xafa   :  { %2091 = vmatpush.msra.mxu2 %v2075_v28 }
 0xafc   :  { %2092 = vmatpush.msra.mxu2 %v2074_v29 }
 0xafe   :  { %2093 = vmatpush.msra.mxu2 %v2073_v30 }
 0xb00   :  { %2094 = vmatpush.msra.mxu2 %v2072_v31 }
 0xb02   :  { %2095 = vmatpush.msra.mxu2 %v2071_v32 }
 0xb04   :  { %2096 = vmatpush.msra.mxu2 %v2070_v40 }
 0xb06   :  { %2097 = vmatpush.msra.mxu2 %v2069_v41 }
 0xb08   :  { %2098 = vmatpush.msra.mxu2 %v2068_v42 }
 0xb7c   :  { %v1942_v20 = vpop.f32.mrf.mxu2 }
 0xb7d   :  { %v1943_v21 = vadd.f32 %v2191_v19, %v1942_v20 }
 0xb7f   :  { %v1945_v22 = vmax.f32 %v1943_v21, 0.0 }
 0xb81   :  { %2147 = vmatmul.msk.f32.vlgmr.msrb.gmra.mxu2 %vm1859_vm4, %v1945_v22 }
 0xc04   :  { %v2023_v45 = vpop.f32.mrf.mxu2 }
 0xc05   :  { %v2024_v36 = vadd.f32 %v2023_v45, %v2000_v35 }
 0xc07   :  { %v2030_v37 = vadd.f32 %v2192_v34, %v2024_v36 }
 0xc09   :  { %v2031_v39 = vmax.f32 %v2030_v37, 0.0 }
 0xc0b   :  { %2148 = vmatmul.msk.f32.vlgmr.msrb.gmra.mxu0 %vm1859_vm4, %v2031_v39 }
 0xc88   :  { %v2064_v46 = vpop.f32.mrf.mxu0 }
 0xc89   :  { %v2065_v48 = vadd.f32 %v2193_v44, %v2064_v46 }
 0xc8b   :  { %v2067_v55 = vmax.f32 %v2065_v48, 0.0 }
 0xc8d   :  { %2149 = vmatmul.msk.f32.vlgmr.msra.gmra.mxu2 %vm1859_vm4, %v2067_v55 }
 0xd10   :  { %v2100_v50 = vpop.f32.mrf.mxu2 }
 0xd11   :  { %v2101_v51 = vadd.f32 %v2194_v49, %v2100_v50 }
 0xd13   :  { %2103 = vst [vmem:[#allocation40] sm:$0xff] %v2101_v51 }
 0xd14   :  { %2114 = dma.vmem_to_hbm [thread:$0]  %s2110_s11, 128, %s2112_s8, [#allocation4]  }
 0xd15   :  { %2857 = dma.done.wait [#allocation4], 128  }
 0xd16   :  { %2858 = vsyncadd [#allocation4], 4294967168 }
 0xd17   :  { %2119 = vsyncpa [#allocation3], 1 }
 0xd18   :  { %2120 = vsyncpa [#allocation6], 1 }
 0xd19   :  { %2121 = vsyncpa [#allocation9], 1 }
 0xd1a   :  { %2122 = vsyncpa [#allocation12], 1 }
 0xd1b   :  { %2123 = vsyncpa [#allocation15], 1 }
 0xd1c   :  { %2124 = vsyncpa [#allocation18], 1 }
 0xd1d   :  { %2125 = vsyncpa [#allocation21], 1 }
 0xd1e   :  { %2126 = vsyncpa [#allocation24], 1 }
 0xd1f   :  { %2127 = vsyncpa [#allocation27], 1 }
 0xd20   :  { %2128 = vsyncpa [#allocation30], 1 }
 0xd21   :  { %2129 = vsyncpa [#allocation33], 1 }
 0xd22   :  { %2130 = vsyncpa [#allocation36], 1 }
 0xd23   :  { %2131 = vsyncpa [#allocation39], 1 }
 0xd24   :  { %2132 = vsyncpa [#allocation4], 1 }

</bundles_post_ra>
